<compile_context>
chip_gen: v5e
topology: v5e:2x2
jax: 0.10.0
libtpu: 0.0.40
codegen_flags: <defaults>
</compile_context>

<pallas_src>
import functools

import jax
import jax.numpy as jnp
import numpy as np
from jax.experimental import pallas as pl
from jax.experimental.pallas import tpu as pltpu


# ----------------------------------------------------------------------------
# Pallas kernel: full Generator forward for one batch chunk (all operands in
# VMEM; the recurrence is inherently serial so it runs as one unrolled body).
# ----------------------------------------------------------------------------
def generator_kernel(
    latent_ref, x0_ref, gumbel_ref,
    Wi_ref, bi_ref,          # fused [Wi | Wil]   (z_dim, 2H), (1, 2H)
    Whc_ref, bhc_ref,        # fused [Wh | Wc]    (H, 2H),     (1, 2H)
    Whcl_ref, bhcl_ref,      # fused [Whl | Wcl]  (H, 2H),     (1, 2H)
    Wl_ref, bl_ref,          # fused LSTM gates   (H_inputs+H, 4H), (1, 4H)
    Wup_ref, bup_ref, Wdn_both_ref,
    Wout_row_ref, bout_ref,
    out_ref, out_lines_ref,
    *, rw_len, temp, use_bf16_matmuls,
):
    f32 = jnp.float32
    bb = x0_ref.shape[0]            # batch chunk (multiple of 8)
    H_inputs = x0_ref.shape[1]
    H = Whc_ref.shape[0]            # hidden size
    LPAD = out_lines_ref.shape[1]   # lane-padded line-logit width (>= rw_len)

    latent = latent_ref[...]
    x = x0_ref[...]

    # fused prologue: 3 MXU pushes instead of 6
    inter_both = jnp.tanh(
        jnp.dot(latent, Wi_ref[...], preferred_element_type=f32) + bi_ref[...])
    inter, inter_l = inter_both[:, :H], inter_both[:, H:]
    hc = jnp.tanh(
        jnp.dot(inter, Whc_ref[...], preferred_element_type=f32) + bhc_ref[...])
    h, c = hc[:, :H], hc[:, H:]
    hcl = jnp.tanh(
        jnp.dot(inter_l, Whcl_ref[...], preferred_element_type=f32) + bhcl_ref[...])
    h_l, c_l = hcl[:, :H], hcl[:, H:]

    # hoist all weights out of the loop (avoid repeated broadcasts/loads)
    mm_dtype = jnp.bfloat16 if use_bf16_matmuls else f32
    Wl = Wl_ref[...]                            # (H_inputs + H, 4H)
    bl = bl_ref[...]                            # (1, 4H)  (+1.0 forget folded)
    Wup = Wup_ref[...].astype(mm_dtype)         # (H, N)
    bup = bup_ref[...]                          # (1, N)
    Wdn_both = Wdn_both_ref[...].astype(mm_dtype)  # (N, 2*H_inputs)
    wout = Wout_row_ref[...]                    # (1, H)  W_out_lines as a row
    bout = bout_ref[...]                        # (1, 1)
    inv_temp = 1.0 / temp

    lane_ids = jax.lax.broadcasted_iota(jnp.int32, (bb, LPAD), 1)
    line_acc = jnp.zeros((bb, LPAD), f32)       # persistent edge-logit slab

    def lstm_step(xt, hx, cx):
        # ONE fused gate matmul on the serial critical path
        g = jnp.dot(jnp.concatenate([xt, hx], axis=1), Wl,
                    preferred_element_type=f32) + bl
        # torch gate order from gates.chunk(4,1): [in, cell, forget, out]
        ingate = jax.nn.sigmoid(g[:, 0 * H:1 * H])
        cellgate = jnp.tanh(g[:, 1 * H:2 * H])
        forgetgate = jax.nn.sigmoid(g[:, 2 * H:3 * H])   # +1.0 already in bl
        outgate = jax.nn.sigmoid(g[:, 3 * H:4 * H])
        cy = cx * forgetgate + ingate * cellgate
        hy = outgate * jnp.tanh(cy)
        return hy, cy

    def line_logit(hl):
        # (H,1) projection as VPU multiply + XLU lane reduce (no MXU push)
        return jnp.sum(hl * wout, axis=-1, keepdims=True) + bout   # (bb, 1)

    xl_prev = None

    # rw_len is a small static constant -> fully unrolled interleaved loop.
    # TODO(synk): switch to lax.fori_loop with carried state if rw_len grows.
    for t in range(rw_len):
        if t == 0:
            # structure step 0 alone (line chain has no input yet)
            h, c = lstm_step(x, h, c)
        else:
            # combined step: structure step t + line step t-1 share one fused
            # gate matmul (both chains use the same cell, as in the reference).
            hy, cy = lstm_step(jnp.concatenate([x, xl_prev], axis=0),
                               jnp.concatenate([h, h_l], axis=0),
                               jnp.concatenate([c, c_l], axis=0))
            h, h_l = hy[:bb], hy[bb:]
            c, c_l = cy[:bb], cy[bb:]
            # edge logit for line step t-1 -> lane t-1 of the accumulator
            line_acc = jnp.where(lane_ids == (t - 1), line_logit(h_l), line_acc)

        # gumbel-softmax (hard; straight-through forward value)
        z = (jnp.dot(h.astype(mm_dtype), Wup, preferred_element_type=f32)
             + bup + gumbel_ref[t]) * inv_temp
        z_max = jnp.max(z, axis=1, keepdims=True)
        p = jnp.exp(z - z_max)
        y = p * pl.reciprocal(jnp.sum(p, axis=1, keepdims=True), approx=True)
        # hard argmax taken directly from z (monotone transform of y): saves a
        # second cross-lane max reduction per step.
        y_hard = (z == z_max).astype(f32)
        y = (y_hard - y) + y
        out_ref[:, t, :] = y                     # lane-dense (bb, N) store

        # fused down-projections: [next structure input | line input step t]
        xdn = jnp.dot(y.astype(mm_dtype), Wdn_both, preferred_element_type=f32)
        x = xdn[:, :H_inputs]
        xl_prev = xdn[:, H_inputs:]

    # final line step (index rw_len-1) standalone
    h_l, c_l = lstm_step(xl_prev, h_l, c_l)
    line_acc = jnp.where(lane_ids == (rw_len - 1), line_logit(h_l), line_acc)

    # single lane-dense store of all edge-weight logits
    out_lines_ref[...] = line_acc


# ----------------------------------------------------------------------------
# Wrapper
# ----------------------------------------------------------------------------
def generator_forward(params, latent, inputs0, gumbel, *, temp,
                      batch_chunk=None, use_bf16_matmuls=False):
    rw_len, B, N = gumbel.shape
    z_dim = latent.shape[1]
    H_inputs = inputs0.shape[1]
    H = params["Wh"].shape[0]

    # pad batch to a sublane multiple of 8 (padded rows are sliced off below)
    B_pad = ((B + 7) // 8) * 8
    if B_pad != B:
        pad = B_pad - B
        latent = jnp.pad(latent, ((0, pad), (0, 0)))
        inputs0 = jnp.pad(inputs0, ((0, pad), (0, 0)))
        gumbel = jnp.pad(gumbel, ((0, 0), (0, pad), (0, 0)))

    # Default: ONE grid step over the whole padded batch (best on 1-TC
    # v5e/v6e). On v7x pass batch_chunk = B_pad // 2 (multiple of 8) to shard
    # the batch across both TensorCores.
    bb = B_pad if batch_chunk is None else batch_chunk
    assert B_pad % bb == 0 and bb % 8 == 0, "batch chunk must be a multiple of 8"

    # lane-padded width for the edge-logit output (lane-dense store)
    LPAD = max(128, ((rw_len + 127) // 128) * 128)

    # module-native params -> fused kernel layout (cheap one-time XLA ops)
    Wi_both = jnp.concatenate([params["Wi"], params["Wil"]], axis=1)    # (z_dim, 2H)
    bi_both = jnp.concatenate([params["bi"], params["bil"]], axis=1)    # (1, 2H)
    Whc = jnp.concatenate([params["Wh"], params["Wc"]], axis=1)         # (H, 2H)
    bhc = jnp.concatenate([params["bh"], params["bc"]], axis=1)         # (1, 2H)
    Whcl = jnp.concatenate([params["Whl"], params["Wcl"]], axis=1)      # (H, 2H)
    bhcl = jnp.concatenate([params["bhl"], params["bcl"]], axis=1)      # (1, 2H)
    bl_fold = params["bl"].at[:, 2 * H:3 * H].add(1.0)                  # fold forget +1
    Wdn_both = jnp.concatenate([params["Wdn"], params["Wdnl"]], axis=1)  # (N, 2*H_in)
    Wout_row = params["Wout"].T                                         # (1, H)

    ordered = [
        latent, inputs0, gumbel,
        Wi_both, bi_both,
        Whc, bhc,
        Whcl, bhcl,
        params["Wl"], bl_fold,
        params["Wup"], params["bup"], Wdn_both,
        Wout_row, params["bout"],
    ]

    def replicated(a):
        # full-array block, same block for every grid step (weights)
        return pl.BlockSpec(a.shape, lambda i, _nd=a.ndim: (0,) * _nd)

    in_specs = [
        pl.BlockSpec((bb, z_dim), lambda i: (i, 0)),
        pl.BlockSpec((bb, H_inputs), lambda i: (i, 0)),
        pl.BlockSpec((rw_len, bb, N), lambda i: (0, i, 0)),
    ] + [replicated(a) for a in ordered[3:]]

    out, out_lines = pl.pallas_call(
        functools.partial(generator_kernel, rw_len=rw_len, temp=temp,
                          use_bf16_matmuls=use_bf16_matmuls),
        out_shape=(
            jax.ShapeDtypeStruct((B_pad, rw_len, N), jnp.float32),
            jax.ShapeDtypeStruct((B_pad, LPAD), jnp.float32),
        ),
        grid=(B_pad // bb,),
        in_specs=in_specs,
        out_specs=(
            pl.BlockSpec((bb, rw_len, N), lambda i: (i, 0, 0)),
            pl.BlockSpec((bb, LPAD), lambda i: (i, 0)),
        ),
        compiler_params=pltpu.CompilerParams(
            dimension_semantics=("parallel",)),   # only matters when grid > 1 (v7x)
    )(*ordered)

    out = out[:B]                                 # (B, rw_len, N) — no transpose
    out_lines = out_lines[:B, :rw_len, None]      # (B, rw_len, 1)
    return out, out_lines


# ----------------------------------------------------------------------------
# Pure-JAX reference (mirrors the torch module math) used to check the kernel.
# ----------------------------------------------------------------------------
def reference_forward(params, latent, inputs0, gumbel, *, temp):
    def linear(x, w, b=None):
        y = jnp.dot(x, w, preferred_element_type=jnp.float32)
        return y if b is None else y + b

    inter = jnp.tanh(linear(latent, params["Wi"], params["bi"]))
    inter_l = jnp.tanh(linear(latent, params["Wil"], params["bil"]))
    h = jnp.tanh(linear(inter, params["Wh"], params["bh"]))
    c = jnp.tanh(linear(inter, params["Wc"], params["bc"]))
    h_l = jnp.tanh(linear(inter_l, params["Whl"], params["bhl"]))
    c_l = jnp.tanh(linear(inter_l, params["Wcl"], params["bcl"]))

    Wl, bl = params["Wl"], params["bl"]

    def lstm_step(xt, hx, cx):
        g = jnp.concatenate([xt, hx], axis=1) @ Wl + bl
        ig, cg, fg, og = jnp.split(g, 4, axis=1)
        ig = jax.nn.sigmoid(ig)
        cg = jnp.tanh(cg)
        fg = jax.nn.sigmoid(fg + 1.0)
        og = jax.nn.sigmoid(og)
        cy = cx * fg + ig * cg
        return og * jnp.tanh(cy), cy

    x = inputs0
    out, out_lines = [], []
    for t in range(gumbel.shape[0]):
        h, c = lstm_step(x, h, c)
        logits = linear(h, params["Wup"], params["bup"])
        y = jax.nn.softmax((logits + gumbel[t]) / temp, axis=1)
        y_hard = (y == jnp.max(y, axis=1, keepdims=True)).astype(jnp.float32)
        y = (y_hard - y) + y
        x = y @ params["Wdn"]
        out.append(y)
    for t in range(gumbel.shape[0]):
        xl = out[t] @ params["Wdnl"]
        h_l, c_l = lstm_step(xl, h_l, c_l)   # same cell in both loops (as in torch ref)
        out_lines.append(linear(h_l, params["Wout"], params["bout"]))
    return jnp.stack(out, axis=1), jnp.stack(out_lines, axis=1)


# ----------------------------------------------------------------------------
# Deterministic synthetic parameter init (xavier-uniform-like, zero biases).
# Weights are stored pre-transposed: y = x @ W + b.
# ----------------------------------------------------------------------------
def init_params(key, H_inputs, H, z_dim, N):
    def xavier(k, fan_in, fan_out, shape):
        limit = np.sqrt(6.0 / (fan_in + fan_out))
        return jax.random.uniform(k, shape, jnp.float32, -limit, limit)

    keys = jax.random.split(key, 12)
    return {
        "Wi":  xavier(keys[0], z_dim, H, (z_dim, H)),  "bi":  jnp.zeros((1, H), jnp.float32),
        "Wil": xavier(keys[1], z_dim, H, (z_dim, H)),  "bil": jnp.zeros((1, H), jnp.float32),
        "Wh":  xavier(keys[2], H, H, (H, H)),          "bh":  jnp.zeros((1, H), jnp.float32),
        "Wc":  xavier(keys[3], H, H, (H, H)),          "bc":  jnp.zeros((1, H), jnp.float32),
        "Whl": xavier(keys[4], H, H, (H, H)),          "bhl": jnp.zeros((1, H), jnp.float32),
        "Wcl": xavier(keys[5], H, H, (H, H)),          "bcl": jnp.zeros((1, H), jnp.float32),
        # LSTM cell: Linear(H_inputs + H -> 4H), fused gate weight (gate order
        # [in, cell, forget, out] as produced by torch gates.chunk(4, 1))
        "Wl":  xavier(keys[6], H_inputs + H, 4 * H, (H_inputs + H, 4 * H)),
        "bl":  jnp.zeros((1, 4 * H), jnp.float32),
        "Wup": xavier(keys[7], H, N, (H, N)),          "bup": jnp.zeros((1, N), jnp.float32),
        "Wdn":  xavier(keys[8], N, H_inputs, (N, H_inputs)),
        "Wdnl": xavier(keys[9], N, H_inputs, (N, H_inputs)),
        "Wout": xavier(keys[10], H, 1, (H, 1)),        "bout": jnp.zeros((1, 1), jnp.float32),
    }


if __name__ == "__main__":
    # small shapes consistent with the module
    B, z_dim, H_inputs, H, N, rw_len = 16, 16, 16, 32, 128, 4
    temp = 0.9

    key = jax.random.PRNGKey(0)
    k_param, k_latent, k_gumbel = jax.random.split(key, 3)

    params = init_params(k_param, H_inputs, H, z_dim, N)
    latent = jax.random.normal(k_latent, (B, z_dim), jnp.float32)
    inputs0 = jnp.zeros((B, H_inputs), jnp.float32)  # init_hidden()

    # gumbel noise precomputed in glue, same formula as sample_gumbel()
    eps = 1e-20
    U = jax.random.uniform(k_gumbel, (rw_len, B, N), jnp.float32)
    gumbel = -jnp.log(-jnp.log(U + eps) + eps)

    # default: whole padded batch in one grid step (best on v5e/v6e; on v7x
    # pass batch_chunk=8 here to split the batch across both TensorCores)
    out, out_lines = jax.block_until_ready(
        generator_forward(params, latent, inputs0, gumbel, temp=temp))

    assert out.shape == (B, rw_len, N)
    assert out_lines.shape == (B, rw_len, 1)

    ref_out, ref_out_lines = reference_forward(
        params, latent, inputs0, gumbel, temp=temp)
    np.testing.assert_allclose(np.asarray(out), np.asarray(ref_out),
                               rtol=2e-4, atol=2e-4)
    np.testing.assert_allclose(np.asarray(out_lines), np.asarray(ref_out_lines),
                               rtol=2e-4, atol=2e-4)

    print("KERNEL_OK")
</pallas_src>

<mosaic_0001>
module attributes {stable_mosaic.version = 11 : i64} {
  func.func @generator_kernel(%arg0: i32, %arg1: memref<16x16xf32, #tpu.memory_space<vmem>>, %arg2: memref<16x16xf32, #tpu.memory_space<vmem>>, %arg3: memref<4x16x128xf32, #tpu.memory_space<vmem>>, %arg4: memref<16x64xf32, #tpu.memory_space<vmem>>, %arg5: memref<1x64xf32, #tpu.memory_space<vmem>>, %arg6: memref<32x64xf32, #tpu.memory_space<vmem>>, %arg7: memref<1x64xf32, #tpu.memory_space<vmem>>, %arg8: memref<32x64xf32, #tpu.memory_space<vmem>>, %arg9: memref<1x64xf32, #tpu.memory_space<vmem>>, %arg10: memref<48x128xf32, #tpu.memory_space<vmem>>, %arg11: memref<1x128xf32, #tpu.memory_space<vmem>>, %arg12: memref<32x128xf32, #tpu.memory_space<vmem>>, %arg13: memref<1x128xf32, #tpu.memory_space<vmem>>, %arg14: memref<128x32xf32, #tpu.memory_space<vmem>>, %arg15: memref<1x32xf32, #tpu.memory_space<vmem>>, %arg16: memref<1x1xf32, #tpu.memory_space<vmem>>, %arg17: memref<16x4x128xf32, #tpu.memory_space<vmem>>, %arg18: memref<16x128xf32, #tpu.memory_space<vmem>>) attributes {dimension_semantics = [#tpu.dimension_semantics<parallel>], iteration_bounds = array<i64: 1>, scalar_prefetch = 0 : i64, scratch_operands = 0 : i64, tpu.core_type = #tpu.core_type<tc>, window_params = [{transform_indices = @transform_0, window_bounds = array<i64: 16, 16>}, {transform_indices = @transform_1, window_bounds = array<i64: 16, 16>}, {transform_indices = @transform_2, window_bounds = array<i64: 4, 16, 128>}, {pipeline_mode = #tpu.pipeline_mode<synchronous>, transform_indices = @transform_3, window_bounds = array<i64: 16, 64>}, {pipeline_mode = #tpu.pipeline_mode<synchronous>, transform_indices = @transform_4, window_bounds = array<i64: 1, 64>}, {pipeline_mode = #tpu.pipeline_mode<synchronous>, transform_indices = @transform_5, window_bounds = array<i64: 32, 64>}, {pipeline_mode = #tpu.pipeline_mode<synchronous>, transform_indices = @transform_6, window_bounds = array<i64: 1, 64>}, {pipeline_mode = #tpu.pipeline_mode<synchronous>, transform_indices = @transform_7, window_bounds = array<i64: 32, 64>}, {pipeline_mode = #tpu.pipeline_mode<synchronous>, transform_indices = @transform_8, window_bounds = array<i64: 1, 64>}, {pipeline_mode = #tpu.pipeline_mode<synchronous>, transform_indices = @transform_9, window_bounds = array<i64: 48, 128>}, {pipeline_mode = #tpu.pipeline_mode<synchronous>, transform_indices = @transform_10, window_bounds = array<i64: 1, 128>}, {pipeline_mode = #tpu.pipeline_mode<synchronous>, transform_indices = @transform_11, window_bounds = array<i64: 32, 128>}, {pipeline_mode = #tpu.pipeline_mode<synchronous>, transform_indices = @transform_12, window_bounds = array<i64: 1, 128>}, {pipeline_mode = #tpu.pipeline_mode<synchronous>, transform_indices = @transform_13, window_bounds = array<i64: 128, 32>}, {pipeline_mode = #tpu.pipeline_mode<synchronous>, transform_indices = @transform_14, window_bounds = array<i64: 1, 32>}, {pipeline_mode = #tpu.pipeline_mode<synchronous>, transform_indices = @transform_15, window_bounds = array<i64: 1, 1>}, {transform_indices = @transform_16, window_bounds = array<i64: 16, 4, 128>}, {transform_indices = @transform_17, window_bounds = array<i64: 16, 128>}]} {
    %c0 = arith.constant 0 : index
    %c0_0 = arith.constant 0 : index
    %0 = vector.load %arg1[%c0, %c0_0] : memref<16x16xf32, #tpu.memory_space<vmem>>, vector<16x16xf32>
    %c0_1 = arith.constant 0 : index
    %c0_2 = arith.constant 0 : index
    %1 = vector.load %arg2[%c0_1, %c0_2] : memref<16x16xf32, #tpu.memory_space<vmem>>, vector<16x16xf32>
    %c0_3 = arith.constant 0 : index
    %c0_4 = arith.constant 0 : index
    %2 = vector.load %arg4[%c0_3, %c0_4] : memref<16x64xf32, #tpu.memory_space<vmem>>, vector<16x64xf32>
    %cst = arith.constant dense<0.000000e+00> : vector<16x64xf32>
    %3 = tpu.matmul %0, %2, %cst {dimension_numbers = #tpu.dot_dimension_numbers<[1], [0], [0], [1], [0, 0, 1, 1], [], []>} : vector<16x16xf32>, vector<16x64xf32>, vector<16x64xf32> -> vector<16x64xf32>
    %c0_5 = arith.constant 0 : index
    %c0_6 = arith.constant 0 : index
    %4 = vector.load %arg5[%c0_5, %c0_6] : memref<1x64xf32, #tpu.memory_space<vmem>>, vector<1x64xf32>
    %5 = vector.broadcast %4 : vector<1x64xf32> to vector<16x64xf32>
    %6 = arith.addf %3, %5 : vector<16x64xf32>
    %7 = math.tanh %6 : vector<16x64xf32>
    %8 = vector.extract_strided_slice %7 {offsets = [0, 0], sizes = [16, 32], strides = [1, 1]} : vector<16x64xf32> to vector<16x32xf32>
    %9 = vector.extract_strided_slice %7 {offsets = [0, 32], sizes = [16, 32], strides = [1, 1]} : vector<16x64xf32> to vector<16x32xf32>
    %c0_7 = arith.constant 0 : index
    %c0_8 = arith.constant 0 : index
    %10 = vector.load %arg6[%c0_7, %c0_8] : memref<32x64xf32, #tpu.memory_space<vmem>>, vector<32x64xf32>
    %cst_9 = arith.constant dense<0.000000e+00> : vector<16x64xf32>
    %11 = tpu.matmul %8, %10, %cst_9 {dimension_numbers = #tpu.dot_dimension_numbers<[1], [0], [0], [1], [0, 0, 1, 1], [], []>} : vector<16x32xf32>, vector<32x64xf32>, vector<16x64xf32> -> vector<16x64xf32>
    %c0_10 = arith.constant 0 : index
    %c0_11 = arith.constant 0 : index
    %12 = vector.load %arg7[%c0_10, %c0_11] : memref<1x64xf32, #tpu.memory_space<vmem>>, vector<1x64xf32>
    %13 = vector.broadcast %12 : vector<1x64xf32> to vector<16x64xf32>
    %14 = arith.addf %11, %13 : vector<16x64xf32>
    %15 = math.tanh %14 : vector<16x64xf32>
    %16 = vector.extract_strided_slice %15 {offsets = [0, 0], sizes = [16, 32], strides = [1, 1]} : vector<16x64xf32> to vector<16x32xf32>
    %17 = vector.extract_strided_slice %15 {offsets = [0, 32], sizes = [16, 32], strides = [1, 1]} : vector<16x64xf32> to vector<16x32xf32>
    %c0_12 = arith.constant 0 : index
    %c0_13 = arith.constant 0 : index
    %18 = vector.load %arg8[%c0_12, %c0_13] : memref<32x64xf32, #tpu.memory_space<vmem>>, vector<32x64xf32>
    %cst_14 = arith.constant dense<0.000000e+00> : vector<16x64xf32>
    %19 = tpu.matmul %9, %18, %cst_14 {dimension_numbers = #tpu.dot_dimension_numbers<[1], [0], [0], [1], [0, 0, 1, 1], [], []>} : vector<16x32xf32>, vector<32x64xf32>, vector<16x64xf32> -> vector<16x64xf32>
    %c0_15 = arith.constant 0 : index
    %c0_16 = arith.constant 0 : index
    %20 = vector.load %arg9[%c0_15, %c0_16] : memref<1x64xf32, #tpu.memory_space<vmem>>, vector<1x64xf32>
    %21 = vector.broadcast %20 : vector<1x64xf32> to vector<16x64xf32>
    %22 = arith.addf %19, %21 : vector<16x64xf32>
    %23 = math.tanh %22 : vector<16x64xf32>
    %24 = vector.extract_strided_slice %23 {offsets = [0, 0], sizes = [16, 32], strides = [1, 1]} : vector<16x64xf32> to vector<16x32xf32>
    %25 = vector.extract_strided_slice %23 {offsets = [0, 32], sizes = [16, 32], strides = [1, 1]} : vector<16x64xf32> to vector<16x32xf32>
    %c0_17 = arith.constant 0 : index
    %c0_18 = arith.constant 0 : index
    %26 = vector.load %arg10[%c0_17, %c0_18] : memref<48x128xf32, #tpu.memory_space<vmem>>, vector<48x128xf32>
    %c0_19 = arith.constant 0 : index
    %c0_20 = arith.constant 0 : index
    %27 = vector.load %arg11[%c0_19, %c0_20] : memref<1x128xf32, #tpu.memory_space<vmem>>, vector<1x128xf32>
    %c0_21 = arith.constant 0 : index
    %c0_22 = arith.constant 0 : index
    %28 = vector.load %arg12[%c0_21, %c0_22] : memref<32x128xf32, #tpu.memory_space<vmem>>, vector<32x128xf32>
    %c0_23 = arith.constant 0 : index
    %c0_24 = arith.constant 0 : index
    %29 = vector.load %arg13[%c0_23, %c0_24] : memref<1x128xf32, #tpu.memory_space<vmem>>, vector<1x128xf32>
    %c0_25 = arith.constant 0 : index
    %c0_26 = arith.constant 0 : index
    %30 = vector.load %arg14[%c0_25, %c0_26] : memref<128x32xf32, #tpu.memory_space<vmem>>, vector<128x32xf32>
    %c0_27 = arith.constant 0 : index
    %c0_28 = arith.constant 0 : index
    %31 = vector.load %arg15[%c0_27, %c0_28] : memref<1x32xf32, #tpu.memory_space<vmem>>, vector<1x32xf32>
    %c0_29 = arith.constant 0 : index
    %c0_30 = arith.constant 0 : index
    %32 = vector.load %arg16[%c0_29, %c0_30] : memref<1x1xf32, #tpu.memory_space<vmem>>, vector<1x1xf32>
    %33 = tpu.iota {dimensions = array<i32: 1>} : vector<16x128xi32>
    %cst_31 = arith.constant 0.000000e+00 : f32
    %34 = vector.broadcast %cst_31 : f32 to vector<16x128xf32>
    %35 = tpu.concatenate %1, %16 in 1 : vector<16x16xf32>, vector<16x32xf32> -> vector<16x48xf32>
    %cst_32 = arith.constant dense<0.000000e+00> : vector<16x128xf32>
    %36 = tpu.matmul %35, %26, %cst_32 {dimension_numbers = #tpu.dot_dimension_numbers<[1], [0], [0], [1], [0, 0, 1, 1], [], []>} : vector<16x48xf32>, vector<48x128xf32>, vector<16x128xf32> -> vector<16x128xf32>
    %37 = vector.broadcast %27 : vector<1x128xf32> to vector<16x128xf32>
    %38 = arith.addf %36, %37 : vector<16x128xf32>
    %39 = vector.extract_strided_slice %38 {offsets = [0, 0], sizes = [16, 32], strides = [1, 1]} : vector<16x128xf32> to vector<16x32xf32>
    %40 = arith.negf %39 : vector<16x32xf32>
    %41 = math.exp %40 : vector<16x32xf32>
    %cst_33 = arith.constant 1.000000e+00 : f32
    %42 = vector.broadcast %cst_33 : f32 to vector<16x32xf32>
    %43 = arith.addf %42, %41 : vector<16x32xf32>
    %44 = arith.divf %42, %43 : vector<16x32xf32>
    %45 = vector.extract_strided_slice %38 {offsets = [0, 32], sizes = [16, 32], strides = [1, 1]} : vector<16x128xf32> to vector<16x32xf32>
    %46 = math.tanh %45 : vector<16x32xf32>
    %47 = vector.extract_strided_slice %38 {offsets = [0, 64], sizes = [16, 32], strides = [1, 1]} : vector<16x128xf32> to vector<16x32xf32>
    %48 = arith.negf %47 : vector<16x32xf32>
    %49 = math.exp %48 : vector<16x32xf32>
    %cst_34 = arith.constant 1.000000e+00 : f32
    %50 = vector.broadcast %cst_34 : f32 to vector<16x32xf32>
    %51 = arith.addf %50, %49 : vector<16x32xf32>
    %52 = arith.divf %50, %51 : vector<16x32xf32>
    %53 = vector.extract_strided_slice %38 {offsets = [0, 96], sizes = [16, 32], strides = [1, 1]} : vector<16x128xf32> to vector<16x32xf32>
    %54 = arith.negf %53 : vector<16x32xf32>
    %55 = math.exp %54 : vector<16x32xf32>
    %cst_35 = arith.constant 1.000000e+00 : f32
    %56 = vector.broadcast %cst_35 : f32 to vector<16x32xf32>
    %57 = arith.addf %56, %55 : vector<16x32xf32>
    %58 = arith.divf %56, %57 : vector<16x32xf32>
    %59 = arith.mulf %17, %52 : vector<16x32xf32>
    %60 = arith.mulf %44, %46 : vector<16x32xf32>
    %61 = arith.addf %59, %60 : vector<16x32xf32>
    %62 = math.tanh %61 : vector<16x32xf32>
    %63 = arith.mulf %58, %62 : vector<16x32xf32>
    %cst_36 = arith.constant dense<0.000000e+00> : vector<16x128xf32>
    %64 = tpu.matmul %63, %28, %cst_36 {dimension_numbers = #tpu.dot_dimension_numbers<[1], [0], [0], [1], [0, 0, 1, 1], [], []>} : vector<16x32xf32>, vector<32x128xf32>, vector<16x128xf32> -> vector<16x128xf32>
    %65 = vector.broadcast %29 : vector<1x128xf32> to vector<16x128xf32>
    %66 = arith.addf %64, %65 : vector<16x128xf32>
    %c0_37 = arith.constant 0 : index
    %c0_38 = arith.constant 0 : index
    %c0_39 = arith.constant 0 : index
    %67 = vector.load %arg3[%c0_37, %c0_38, %c0_39] : memref<4x16x128xf32, #tpu.memory_space<vmem>>, vector<1x16x128xf32>
    %68 = vector.shape_cast %67 : vector<1x16x128xf32> to vector<16x128xf32>
    %69 = arith.addf %66, %68 : vector<16x128xf32>
    %cst_40 = arith.constant 1.11111116 : f32
    %70 = vector.broadcast %cst_40 : f32 to vector<16x128xf32>
    %71 = arith.mulf %69, %70 : vector<16x128xf32>
    %cst_41 = arith.constant dense<0xFF800000> : vector<16xf32>
    %72 = vector.multi_reduction <maximumf>, %71, %cst_41 [1] : vector<16x128xf32> to vector<16xf32>
    %73 = vector.shape_cast %72 : vector<16xf32> to vector<16x1xf32>
    %74 = vector.broadcast %73 : vector<16x1xf32> to vector<16x128xf32>
    %75 = arith.subf %71, %74 : vector<16x128xf32>
    %76 = math.exp %75 : vector<16x128xf32>
    %cst_42 = arith.constant dense<0.000000e+00> : vector<16xf32>
    %77 = vector.multi_reduction <add>, %76, %cst_42 [1] : vector<16x128xf32> to vector<16xf32>
    %78 = vector.shape_cast %77 : vector<16xf32> to vector<16x1xf32>
    %79 = tpu.reciprocal %78 {approx = true} : vector<16x1xf32> -> vector<16x1xf32>
    %80 = vector.broadcast %79 : vector<16x1xf32> to vector<16x128xf32>
    %81 = arith.mulf %76, %80 : vector<16x128xf32>
    %82 = vector.broadcast %73 : vector<16x1xf32> to vector<16x128xf32>
    %83 = arith.cmpf oeq, %71, %82 : vector<16x128xf32>
    %84 = arith.extui %83 : vector<16x128xi1> to vector<16x128xi32>
    %85 = arith.sitofp %84 : vector<16x128xi32> to vector<16x128xf32>
    %86 = arith.subf %85, %81 : vector<16x128xf32>
    %87 = arith.addf %86, %81 : vector<16x128xf32>
    %c0_43 = arith.constant 0 : index
    %c0_44 = arith.constant 0 : index
    %c0_45 = arith.constant 0 : index
    %88 = vector.load %arg17[%c0_43, %c0_44, %c0_45] : memref<16x4x128xf32, #tpu.memory_space<vmem>>, vector<16x1x128xf32>
    %89 = vector.shape_cast %88 : vector<16x1x128xf32> to vector<16x128xf32>
    %90 = vector.shape_cast %87 : vector<16x128xf32> to vector<16x1x128xf32>
    tpu.vector_store %arg17[%c0_43, %c0_44, %c0_45], %90 {strides = array<i32>} : memref<16x4x128xf32, #tpu.memory_space<vmem>>, vector<16x1x128xf32>,
    %cst_46 = arith.constant dense<0.000000e+00> : vector<16x32xf32>
    %91 = tpu.matmul %87, %30, %cst_46 {dimension_numbers = #tpu.dot_dimension_numbers<[1], [0], [0], [1], [0, 0, 1, 1], [], []>} : vector<16x128xf32>, vector<128x32xf32>, vector<16x32xf32> -> vector<16x32xf32>
    %92 = vector.extract_strided_slice %91 {offsets = [0, 0], sizes = [16, 16], strides = [1, 1]} : vector<16x32xf32> to vector<16x16xf32>
    %93 = vector.extract_strided_slice %91 {offsets = [0, 16], sizes = [16, 16], strides = [1, 1]} : vector<16x32xf32> to vector<16x16xf32>
    %94 = tpu.concatenate %92, %93 in 0 : vector<16x16xf32>, vector<16x16xf32> -> vector<32x16xf32>
    %95 = tpu.concatenate %63, %24 in 0 : vector<16x32xf32>, vector<16x32xf32> -> vector<32x32xf32>
    %96 = tpu.concatenate %61, %25 in 0 : vector<16x32xf32>, vector<16x32xf32> -> vector<32x32xf32>
    %97 = tpu.concatenate %94, %95 in 1 : vector<32x16xf32>, vector<32x32xf32> -> vector<32x48xf32>
    %cst_47 = arith.constant dense<0.000000e+00> : vector<32x128xf32>
    %98 = tpu.matmul %97, %26, %cst_47 {dimension_numbers = #tpu.dot_dimension_numbers<[1], [0], [0], [1], [0, 0, 1, 1], [], []>} : vector<32x48xf32>, vector<48x128xf32>, vector<32x128xf32> -> vector<32x128xf32>
    %99 = vector.broadcast %27 : vector<1x128xf32> to vector<32x128xf32>
    %100 = arith.addf %98, %99 : vector<32x128xf32>
    %101 = vector.extract_strided_slice %100 {offsets = [0, 0], sizes = [32, 32], strides = [1, 1]} : vector<32x128xf32> to vector<32x32xf32>
    %102 = arith.negf %101 : vector<32x32xf32>
    %103 = math.exp %102 : vector<32x32xf32>
    %cst_48 = arith.constant 1.000000e+00 : f32
    %104 = vector.broadcast %cst_48 : f32 to vector<32x32xf32>
    %105 = arith.addf %104, %103 : vector<32x32xf32>
    %106 = arith.divf %104, %105 : vector<32x32xf32>
    %107 = vector.extract_strided_slice %100 {offsets = [0, 32], sizes = [32, 32], strides = [1, 1]} : vector<32x128xf32> to vector<32x32xf32>
    %108 = math.tanh %107 : vector<32x32xf32>
    %109 = vector.extract_strided_slice %100 {offsets = [0, 64], sizes = [32, 32], strides = [1, 1]} : vector<32x128xf32> to vector<32x32xf32>
    %110 = arith.negf %109 : vector<32x32xf32>
    %111 = math.exp %110 : vector<32x32xf32>
    %cst_49 = arith.constant 1.000000e+00 : f32
    %112 = vector.broadcast %cst_49 : f32 to vector<32x32xf32>
    %113 = arith.addf %112, %111 : vector<32x32xf32>
    %114 = arith.divf %112, %113 : vector<32x32xf32>
    %115 = vector.extract_strided_slice %100 {offsets = [0, 96], sizes = [32, 32], strides = [1, 1]} : vector<32x128xf32> to vector<32x32xf32>
    %116 = arith.negf %115 : vector<32x32xf32>
    %117 = math.exp %116 : vector<32x32xf32>
    %cst_50 = arith.constant 1.000000e+00 : f32
    %118 = vector.broadcast %cst_50 : f32 to vector<32x32xf32>
    %119 = arith.addf %118, %117 : vector<32x32xf32>
    %120 = arith.divf %118, %119 : vector<32x32xf32>
    %121 = arith.mulf %96, %114 : vector<32x32xf32>
    %122 = arith.mulf %106, %108 : vector<32x32xf32>
    %123 = arith.addf %121, %122 : vector<32x32xf32>
    %124 = math.tanh %123 : vector<32x32xf32>
    %125 = arith.mulf %120, %124 : vector<32x32xf32>
    %126 = vector.extract_strided_slice %125 {offsets = [0, 0], sizes = [16, 32], strides = [1, 1]} : vector<32x32xf32> to vector<16x32xf32>
    %127 = vector.extract_strided_slice %125 {offsets = [16, 0], sizes = [16, 32], strides = [1, 1]} : vector<32x32xf32> to vector<16x32xf32>
    %128 = vector.extract_strided_slice %123 {offsets = [0, 0], sizes = [16, 32], strides = [1, 1]} : vector<32x32xf32> to vector<16x32xf32>
    %129 = vector.extract_strided_slice %123 {offsets = [16, 0], sizes = [16, 32], strides = [1, 1]} : vector<32x32xf32> to vector<16x32xf32>
    %c0_i32 = arith.constant 0 : i32
    %130 = vector.broadcast %c0_i32 : i32 to vector<16x128xi32>
    %131 = arith.cmpi eq, %33, %130 : vector<16x128xi32>
    %132 = vector.broadcast %31 : vector<1x32xf32> to vector<16x32xf32>
    %133 = arith.mulf %127, %132 : vector<16x32xf32>
    %cst_51 = arith.constant dense<0.000000e+00> : vector<16xf32>
    %134 = vector.multi_reduction <add>, %133, %cst_51 [1] : vector<16x32xf32> to vector<16xf32>
    %135 = vector.shape_cast %134 : vector<16xf32> to vector<16x1xf32>
    %136 = vector.broadcast %32 : vector<1x1xf32> to vector<16x1xf32>
    %137 = arith.addf %135, %136 : vector<16x1xf32>
    %138 = vector.shape_cast %137 : vector<16x1xf32> to vector<16x1xf32>
    %139 = vector.broadcast %138 : vector<16x1xf32> to vector<16x128xf32>
    %140 = arith.select %131, %139, %34 : vector<16x128xi1>, vector<16x128xf32>
    %cst_52 = arith.constant dense<0.000000e+00> : vector<16x128xf32>
    %141 = tpu.matmul %126, %28, %cst_52 {dimension_numbers = #tpu.dot_dimension_numbers<[1], [0], [0], [1], [0, 0, 1, 1], [], []>} : vector<16x32xf32>, vector<32x128xf32>, vector<16x128xf32> -> vector<16x128xf32>
    %142 = vector.broadcast %29 : vector<1x128xf32> to vector<16x128xf32>
    %143 = arith.addf %141, %142 : vector<16x128xf32>
    %c1 = arith.constant 1 : index
    %c0_53 = arith.constant 0 : index
    %c0_54 = arith.constant 0 : index
    %144 = vector.load %arg3[%c1, %c0_53, %c0_54] : memref<4x16x128xf32, #tpu.memory_space<vmem>>, vector<1x16x128xf32>
    %145 = vector.shape_cast %144 : vector<1x16x128xf32> to vector<16x128xf32>
    %146 = arith.addf %143, %145 : vector<16x128xf32>
    %cst_55 = arith.constant 1.11111116 : f32
    %147 = vector.broadcast %cst_55 : f32 to vector<16x128xf32>
    %148 = arith.mulf %146, %147 : vector<16x128xf32>
    %cst_56 = arith.constant dense<0xFF800000> : vector<16xf32>
    %149 = vector.multi_reduction <maximumf>, %148, %cst_56 [1] : vector<16x128xf32> to vector<16xf32>
    %150 = vector.shape_cast %149 : vector<16xf32> to vector<16x1xf32>
    %151 = vector.broadcast %150 : vector<16x1xf32> to vector<16x128xf32>
    %152 = arith.subf %148, %151 : vector<16x128xf32>
    %153 = math.exp %152 : vector<16x128xf32>
    %cst_57 = arith.constant dense<0.000000e+00> : vector<16xf32>
    %154 = vector.multi_reduction <add>, %153, %cst_57 [1] : vector<16x128xf32> to vector<16xf32>
    %155 = vector.shape_cast %154 : vector<16xf32> to vector<16x1xf32>
    %156 = tpu.reciprocal %155 {approx = true} : vector<16x1xf32> -> vector<16x1xf32>
    %157 = vector.broadcast %156 : vector<16x1xf32> to vector<16x128xf32>
    %158 = arith.mulf %153, %157 : vector<16x128xf32>
    %159 = vector.broadcast %150 : vector<16x1xf32> to vector<16x128xf32>
    %160 = arith.cmpf oeq, %148, %159 : vector<16x128xf32>
    %161 = arith.extui %160 : vector<16x128xi1> to vector<16x128xi32>
    %162 = arith.sitofp %161 : vector<16x128xi32> to vector<16x128xf32>
    %163 = arith.subf %162, %158 : vector<16x128xf32>
    %164 = arith.addf %163, %158 : vector<16x128xf32>
    %c0_58 = arith.constant 0 : index
    %c1_59 = arith.constant 1 : index
    %c0_60 = arith.constant 0 : index
    %165 = vector.load %arg17[%c0_58, %c1_59, %c0_60] : memref<16x4x128xf32, #tpu.memory_space<vmem>>, vector<16x1x128xf32>
    %166 = vector.shape_cast %165 : vector<16x1x128xf32> to vector<16x128xf32>
    %167 = vector.shape_cast %164 : vector<16x128xf32> to vector<16x1x128xf32>
    tpu.vector_store %arg17[%c0_58, %c1_59, %c0_60], %167 {strides = array<i32>} : memref<16x4x128xf32, #tpu.memory_space<vmem>>, vector<16x1x128xf32>,
    %cst_61 = arith.constant dense<0.000000e+00> : vector<16x32xf32>
    %168 = tpu.matmul %164, %30, %cst_61 {dimension_numbers = #tpu.dot_dimension_numbers<[1], [0], [0], [1], [0, 0, 1, 1], [], []>} : vector<16x128xf32>, vector<128x32xf32>, vector<16x32xf32> -> vector<16x32xf32>
    %169 = vector.extract_strided_slice %168 {offsets = [0, 0], sizes = [16, 16], strides = [1, 1]} : vector<16x32xf32> to vector<16x16xf32>
    %170 = vector.extract_strided_slice %168 {offsets = [0, 16], sizes = [16, 16], strides = [1, 1]} : vector<16x32xf32> to vector<16x16xf32>
    %171 = tpu.concatenate %169, %170 in 0 : vector<16x16xf32>, vector<16x16xf32> -> vector<32x16xf32>
    %172 = tpu.concatenate %126, %127 in 0 : vector<16x32xf32>, vector<16x32xf32> -> vector<32x32xf32>
    %173 = tpu.concatenate %128, %129 in 0 : vector<16x32xf32>, vector<16x32xf32> -> vector<32x32xf32>
    %174 = tpu.concatenate %171, %172 in 1 : vector<32x16xf32>, vector<32x32xf32> -> vector<32x48xf32>
    %cst_62 = arith.constant dense<0.000000e+00> : vector<32x128xf32>
    %175 = tpu.matmul %174, %26, %cst_62 {dimension_numbers = #tpu.dot_dimension_numbers<[1], [0], [0], [1], [0, 0, 1, 1], [], []>} : vector<32x48xf32>, vector<48x128xf32>, vector<32x128xf32> -> vector<32x128xf32>
    %176 = vector.broadcast %27 : vector<1x128xf32> to vector<32x128xf32>
    %177 = arith.addf %175, %176 : vector<32x128xf32>
    %178 = vector.extract_strided_slice %177 {offsets = [0, 0], sizes = [32, 32], strides = [1, 1]} : vector<32x128xf32> to vector<32x32xf32>
    %179 = arith.negf %178 : vector<32x32xf32>
    %180 = math.exp %179 : vector<32x32xf32>
    %cst_63 = arith.constant 1.000000e+00 : f32
    %181 = vector.broadcast %cst_63 : f32 to vector<32x32xf32>
    %182 = arith.addf %181, %180 : vector<32x32xf32>
    %183 = arith.divf %181, %182 : vector<32x32xf32>
    %184 = vector.extract_strided_slice %177 {offsets = [0, 32], sizes = [32, 32], strides = [1, 1]} : vector<32x128xf32> to vector<32x32xf32>
    %185 = math.tanh %184 : vector<32x32xf32>
    %186 = vector.extract_strided_slice %177 {offsets = [0, 64], sizes = [32, 32], strides = [1, 1]} : vector<32x128xf32> to vector<32x32xf32>
    %187 = arith.negf %186 : vector<32x32xf32>
    %188 = math.exp %187 : vector<32x32xf32>
    %cst_64 = arith.constant 1.000000e+00 : f32
    %189 = vector.broadcast %cst_64 : f32 to vector<32x32xf32>
    %190 = arith.addf %189, %188 : vector<32x32xf32>
    %191 = arith.divf %189, %190 : vector<32x32xf32>
    %192 = vector.extract_strided_slice %177 {offsets = [0, 96], sizes = [32, 32], strides = [1, 1]} : vector<32x128xf32> to vector<32x32xf32>
    %193 = arith.negf %192 : vector<32x32xf32>
    %194 = math.exp %193 : vector<32x32xf32>
    %cst_65 = arith.constant 1.000000e+00 : f32
    %195 = vector.broadcast %cst_65 : f32 to vector<32x32xf32>
    %196 = arith.addf %195, %194 : vector<32x32xf32>
    %197 = arith.divf %195, %196 : vector<32x32xf32>
    %198 = arith.mulf %173, %191 : vector<32x32xf32>
    %199 = arith.mulf %183, %185 : vector<32x32xf32>
    %200 = arith.addf %198, %199 : vector<32x32xf32>
    %201 = math.tanh %200 : vector<32x32xf32>
    %202 = arith.mulf %197, %201 : vector<32x32xf32>
    %203 = vector.extract_strided_slice %202 {offsets = [0, 0], sizes = [16, 32], strides = [1, 1]} : vector<32x32xf32> to vector<16x32xf32>
    %204 = vector.extract_strided_slice %202 {offsets = [16, 0], sizes = [16, 32], strides = [1, 1]} : vector<32x32xf32> to vector<16x32xf32>
    %205 = vector.extract_strided_slice %200 {offsets = [0, 0], sizes = [16, 32], strides = [1, 1]} : vector<32x32xf32> to vector<16x32xf32>
    %206 = vector.extract_strided_slice %200 {offsets = [16, 0], sizes = [16, 32], strides = [1, 1]} : vector<32x32xf32> to vector<16x32xf32>
    %c1_i32 = arith.constant 1 : i32
    %207 = vector.broadcast %c1_i32 : i32 to vector<16x128xi32>
    %208 = arith.cmpi eq, %33, %207 : vector<16x128xi32>
    %209 = vector.broadcast %31 : vector<1x32xf32> to vector<16x32xf32>
    %210 = arith.mulf %204, %209 : vector<16x32xf32>
    %cst_66 = arith.constant dense<0.000000e+00> : vector<16xf32>
    %211 = vector.multi_reduction <add>, %210, %cst_66 [1] : vector<16x32xf32> to vector<16xf32>
    %212 = vector.shape_cast %211 : vector<16xf32> to vector<16x1xf32>
    %213 = vector.broadcast %32 : vector<1x1xf32> to vector<16x1xf32>
    %214 = arith.addf %212, %213 : vector<16x1xf32>
    %215 = vector.shape_cast %214 : vector<16x1xf32> to vector<16x1xf32>
    %216 = vector.broadcast %215 : vector<16x1xf32> to vector<16x128xf32>
    %217 = arith.select %208, %216, %140 : vector<16x128xi1>, vector<16x128xf32>
    %cst_67 = arith.constant dense<0.000000e+00> : vector<16x128xf32>
    %218 = tpu.matmul %203, %28, %cst_67 {dimension_numbers = #tpu.dot_dimension_numbers<[1], [0], [0], [1], [0, 0, 1, 1], [], []>} : vector<16x32xf32>, vector<32x128xf32>, vector<16x128xf32> -> vector<16x128xf32>
    %219 = vector.broadcast %29 : vector<1x128xf32> to vector<16x128xf32>
    %220 = arith.addf %218, %219 : vector<16x128xf32>
    %c2 = arith.constant 2 : index
    %c0_68 = arith.constant 0 : index
    %c0_69 = arith.constant 0 : index
    %221 = vector.load %arg3[%c2, %c0_68, %c0_69] : memref<4x16x128xf32, #tpu.memory_space<vmem>>, vector<1x16x128xf32>
    %222 = vector.shape_cast %221 : vector<1x16x128xf32> to vector<16x128xf32>
    %223 = arith.addf %220, %222 : vector<16x128xf32>
    %cst_70 = arith.constant 1.11111116 : f32
    %224 = vector.broadcast %cst_70 : f32 to vector<16x128xf32>
    %225 = arith.mulf %223, %224 : vector<16x128xf32>
    %cst_71 = arith.constant dense<0xFF800000> : vector<16xf32>
    %226 = vector.multi_reduction <maximumf>, %225, %cst_71 [1] : vector<16x128xf32> to vector<16xf32>
    %227 = vector.shape_cast %226 : vector<16xf32> to vector<16x1xf32>
    %228 = vector.broadcast %227 : vector<16x1xf32> to vector<16x128xf32>
    %229 = arith.subf %225, %228 : vector<16x128xf32>
    %230 = math.exp %229 : vector<16x128xf32>
    %cst_72 = arith.constant dense<0.000000e+00> : vector<16xf32>
    %231 = vector.multi_reduction <add>, %230, %cst_72 [1] : vector<16x128xf32> to vector<16xf32>
    %232 = vector.shape_cast %231 : vector<16xf32> to vector<16x1xf32>
    %233 = tpu.reciprocal %232 {approx = true} : vector<16x1xf32> -> vector<16x1xf32>
    %234 = vector.broadcast %233 : vector<16x1xf32> to vector<16x128xf32>
    %235 = arith.mulf %230, %234 : vector<16x128xf32>
    %236 = vector.broadcast %227 : vector<16x1xf32> to vector<16x128xf32>
    %237 = arith.cmpf oeq, %225, %236 : vector<16x128xf32>
    %238 = arith.extui %237 : vector<16x128xi1> to vector<16x128xi32>
    %239 = arith.sitofp %238 : vector<16x128xi32> to vector<16x128xf32>
    %240 = arith.subf %239, %235 : vector<16x128xf32>
    %241 = arith.addf %240, %235 : vector<16x128xf32>
    %c0_73 = arith.constant 0 : index
    %c2_74 = arith.constant 2 : index
    %c0_75 = arith.constant 0 : index
    %242 = vector.load %arg17[%c0_73, %c2_74, %c0_75] : memref<16x4x128xf32, #tpu.memory_space<vmem>>, vector<16x1x128xf32>
    %243 = vector.shape_cast %242 : vector<16x1x128xf32> to vector<16x128xf32>
    %244 = vector.shape_cast %241 : vector<16x128xf32> to vector<16x1x128xf32>
    tpu.vector_store %arg17[%c0_73, %c2_74, %c0_75], %244 {strides = array<i32>} : memref<16x4x128xf32, #tpu.memory_space<vmem>>, vector<16x1x128xf32>,
    %cst_76 = arith.constant dense<0.000000e+00> : vector<16x32xf32>
    %245 = tpu.matmul %241, %30, %cst_76 {dimension_numbers = #tpu.dot_dimension_numbers<[1], [0], [0], [1], [0, 0, 1, 1], [], []>} : vector<16x128xf32>, vector<128x32xf32>, vector<16x32xf32> -> vector<16x32xf32>
    %246 = vector.extract_strided_slice %245 {offsets = [0, 0], sizes = [16, 16], strides = [1, 1]} : vector<16x32xf32> to vector<16x16xf32>
    %247 = vector.extract_strided_slice %245 {offsets = [0, 16], sizes = [16, 16], strides = [1, 1]} : vector<16x32xf32> to vector<16x16xf32>
    %248 = tpu.concatenate %246, %247 in 0 : vector<16x16xf32>, vector<16x16xf32> -> vector<32x16xf32>
    %249 = tpu.concatenate %203, %204 in 0 : vector<16x32xf32>, vector<16x32xf32> -> vector<32x32xf32>
    %250 = tpu.concatenate %205, %206 in 0 : vector<16x32xf32>, vector<16x32xf32> -> vector<32x32xf32>
    %251 = tpu.concatenate %248, %249 in 1 : vector<32x16xf32>, vector<32x32xf32> -> vector<32x48xf32>
    %cst_77 = arith.constant dense<0.000000e+00> : vector<32x128xf32>
    %252 = tpu.matmul %251, %26, %cst_77 {dimension_numbers = #tpu.dot_dimension_numbers<[1], [0], [0], [1], [0, 0, 1, 1], [], []>} : vector<32x48xf32>, vector<48x128xf32>, vector<32x128xf32> -> vector<32x128xf32>
    %253 = vector.broadcast %27 : vector<1x128xf32> to vector<32x128xf32>
    %254 = arith.addf %252, %253 : vector<32x128xf32>
    %255 = vector.extract_strided_slice %254 {offsets = [0, 0], sizes = [32, 32], strides = [1, 1]} : vector<32x128xf32> to vector<32x32xf32>
    %256 = arith.negf %255 : vector<32x32xf32>
    %257 = math.exp %256 : vector<32x32xf32>
    %cst_78 = arith.constant 1.000000e+00 : f32
    %258 = vector.broadcast %cst_78 : f32 to vector<32x32xf32>
    %259 = arith.addf %258, %257 : vector<32x32xf32>
    %260 = arith.divf %258, %259 : vector<32x32xf32>
    %261 = vector.extract_strided_slice %254 {offsets = [0, 32], sizes = [32, 32], strides = [1, 1]} : vector<32x128xf32> to vector<32x32xf32>
    %262 = math.tanh %261 : vector<32x32xf32>
    %263 = vector.extract_strided_slice %254 {offsets = [0, 64], sizes = [32, 32], strides = [1, 1]} : vector<32x128xf32> to vector<32x32xf32>
    %264 = arith.negf %263 : vector<32x32xf32>
    %265 = math.exp %264 : vector<32x32xf32>
    %cst_79 = arith.constant 1.000000e+00 : f32
    %266 = vector.broadcast %cst_79 : f32 to vector<32x32xf32>
    %267 = arith.addf %266, %265 : vector<32x32xf32>
    %268 = arith.divf %266, %267 : vector<32x32xf32>
    %269 = vector.extract_strided_slice %254 {offsets = [0, 96], sizes = [32, 32], strides = [1, 1]} : vector<32x128xf32> to vector<32x32xf32>
    %270 = arith.negf %269 : vector<32x32xf32>
    %271 = math.exp %270 : vector<32x32xf32>
    %cst_80 = arith.constant 1.000000e+00 : f32
    %272 = vector.broadcast %cst_80 : f32 to vector<32x32xf32>
    %273 = arith.addf %272, %271 : vector<32x32xf32>
    %274 = arith.divf %272, %273 : vector<32x32xf32>
    %275 = arith.mulf %250, %268 : vector<32x32xf32>
    %276 = arith.mulf %260, %262 : vector<32x32xf32>
    %277 = arith.addf %275, %276 : vector<32x32xf32>
    %278 = math.tanh %277 : vector<32x32xf32>
    %279 = arith.mulf %274, %278 : vector<32x32xf32>
    %280 = vector.extract_strided_slice %279 {offsets = [0, 0], sizes = [16, 32], strides = [1, 1]} : vector<32x32xf32> to vector<16x32xf32>
    %281 = vector.extract_strided_slice %279 {offsets = [16, 0], sizes = [16, 32], strides = [1, 1]} : vector<32x32xf32> to vector<16x32xf32>
    %282 = vector.extract_strided_slice %277 {offsets = [16, 0], sizes = [16, 32], strides = [1, 1]} : vector<32x32xf32> to vector<16x32xf32>
    %c2_i32 = arith.constant 2 : i32
    %283 = vector.broadcast %c2_i32 : i32 to vector<16x128xi32>
    %284 = arith.cmpi eq, %33, %283 : vector<16x128xi32>
    %285 = vector.broadcast %31 : vector<1x32xf32> to vector<16x32xf32>
    %286 = arith.mulf %281, %285 : vector<16x32xf32>
    %cst_81 = arith.constant dense<0.000000e+00> : vector<16xf32>
    %287 = vector.multi_reduction <add>, %286, %cst_81 [1] : vector<16x32xf32> to vector<16xf32>
    %288 = vector.shape_cast %287 : vector<16xf32> to vector<16x1xf32>
    %289 = vector.broadcast %32 : vector<1x1xf32> to vector<16x1xf32>
    %290 = arith.addf %288, %289 : vector<16x1xf32>
    %291 = vector.shape_cast %290 : vector<16x1xf32> to vector<16x1xf32>
    %292 = vector.broadcast %291 : vector<16x1xf32> to vector<16x128xf32>
    %293 = arith.select %284, %292, %217 : vector<16x128xi1>, vector<16x128xf32>
    %cst_82 = arith.constant dense<0.000000e+00> : vector<16x128xf32>
    %294 = tpu.matmul %280, %28, %cst_82 {dimension_numbers = #tpu.dot_dimension_numbers<[1], [0], [0], [1], [0, 0, 1, 1], [], []>} : vector<16x32xf32>, vector<32x128xf32>, vector<16x128xf32> -> vector<16x128xf32>
    %295 = vector.broadcast %29 : vector<1x128xf32> to vector<16x128xf32>
    %296 = arith.addf %294, %295 : vector<16x128xf32>
    %c3 = arith.constant 3 : index
    %c0_83 = arith.constant 0 : index
    %c0_84 = arith.constant 0 : index
    %297 = vector.load %arg3[%c3, %c0_83, %c0_84] : memref<4x16x128xf32, #tpu.memory_space<vmem>>, vector<1x16x128xf32>
    %298 = vector.shape_cast %297 : vector<1x16x128xf32> to vector<16x128xf32>
    %299 = arith.addf %296, %298 : vector<16x128xf32>
    %cst_85 = arith.constant 1.11111116 : f32
    %300 = vector.broadcast %cst_85 : f32 to vector<16x128xf32>
    %301 = arith.mulf %299, %300 : vector<16x128xf32>
    %cst_86 = arith.constant dense<0xFF800000> : vector<16xf32>
    %302 = vector.multi_reduction <maximumf>, %301, %cst_86 [1] : vector<16x128xf32> to vector<16xf32>
    %303 = vector.shape_cast %302 : vector<16xf32> to vector<16x1xf32>
    %304 = vector.broadcast %303 : vector<16x1xf32> to vector<16x128xf32>
    %305 = arith.subf %301, %304 : vector<16x128xf32>
    %306 = math.exp %305 : vector<16x128xf32>
    %cst_87 = arith.constant dense<0.000000e+00> : vector<16xf32>
    %307 = vector.multi_reduction <add>, %306, %cst_87 [1] : vector<16x128xf32> to vector<16xf32>
    %308 = vector.shape_cast %307 : vector<16xf32> to vector<16x1xf32>
    %309 = tpu.reciprocal %308 {approx = true} : vector<16x1xf32> -> vector<16x1xf32>
    %310 = vector.broadcast %309 : vector<16x1xf32> to vector<16x128xf32>
    %311 = arith.mulf %306, %310 : vector<16x128xf32>
    %312 = vector.broadcast %303 : vector<16x1xf32> to vector<16x128xf32>
    %313 = arith.cmpf oeq, %301, %312 : vector<16x128xf32>
    %314 = arith.extui %313 : vector<16x128xi1> to vector<16x128xi32>
    %315 = arith.sitofp %314 : vector<16x128xi32> to vector<16x128xf32>
    %316 = arith.subf %315, %311 : vector<16x128xf32>
    %317 = arith.addf %316, %311 : vector<16x128xf32>
    %c0_88 = arith.constant 0 : index
    %c3_89 = arith.constant 3 : index
    %c0_90 = arith.constant 0 : index
    %318 = vector.load %arg17[%c0_88, %c3_89, %c0_90] : memref<16x4x128xf32, #tpu.memory_space<vmem>>, vector<16x1x128xf32>
    %319 = vector.shape_cast %318 : vector<16x1x128xf32> to vector<16x128xf32>
    %320 = vector.shape_cast %317 : vector<16x128xf32> to vector<16x1x128xf32>
    tpu.vector_store %arg17[%c0_88, %c3_89, %c0_90], %320 {strides = array<i32>} : memref<16x4x128xf32, #tpu.memory_space<vmem>>, vector<16x1x128xf32>,
    %cst_91 = arith.constant dense<0.000000e+00> : vector<16x32xf32>
    %321 = tpu.matmul %317, %30, %cst_91 {dimension_numbers = #tpu.dot_dimension_numbers<[1], [0], [0], [1], [0, 0, 1, 1], [], []>} : vector<16x128xf32>, vector<128x32xf32>, vector<16x32xf32> -> vector<16x32xf32>
    %322 = vector.extract_strided_slice %321 {offsets = [0, 16], sizes = [16, 16], strides = [1, 1]} : vector<16x32xf32> to vector<16x16xf32>
    %323 = tpu.concatenate %322, %281 in 1 : vector<16x16xf32>, vector<16x32xf32> -> vector<16x48xf32>
    %cst_92 = arith.constant dense<0.000000e+00> : vector<16x128xf32>
    %324 = tpu.matmul %323, %26, %cst_92 {dimension_numbers = #tpu.dot_dimension_numbers<[1], [0], [0], [1], [0, 0, 1, 1], [], []>} : vector<16x48xf32>, vector<48x128xf32>, vector<16x128xf32> -> vector<16x128xf32>
    %325 = vector.broadcast %27 : vector<1x128xf32> to vector<16x128xf32>
    %326 = arith.addf %324, %325 : vector<16x128xf32>
    %327 = vector.extract_strided_slice %326 {offsets = [0, 0], sizes = [16, 32], strides = [1, 1]} : vector<16x128xf32> to vector<16x32xf32>
    %328 = arith.negf %327 : vector<16x32xf32>
    %329 = math.exp %328 : vector<16x32xf32>
    %cst_93 = arith.constant 1.000000e+00 : f32
    %330 = vector.broadcast %cst_93 : f32 to vector<16x32xf32>
    %331 = arith.addf %330, %329 : vector<16x32xf32>
    %332 = arith.divf %330, %331 : vector<16x32xf32>
    %333 = vector.extract_strided_slice %326 {offsets = [0, 32], sizes = [16, 32], strides = [1, 1]} : vector<16x128xf32> to vector<16x32xf32>
    %334 = math.tanh %333 : vector<16x32xf32>
    %335 = vector.extract_strided_slice %326 {offsets = [0, 64], sizes = [16, 32], strides = [1, 1]} : vector<16x128xf32> to vector<16x32xf32>
    %336 = arith.negf %335 : vector<16x32xf32>
    %337 = math.exp %336 : vector<16x32xf32>
    %cst_94 = arith.constant 1.000000e+00 : f32
    %338 = vector.broadcast %cst_94 : f32 to vector<16x32xf32>
    %339 = arith.addf %338, %337 : vector<16x32xf32>
    %340 = arith.divf %338, %339 : vector<16x32xf32>
    %341 = vector.extract_strided_slice %326 {offsets = [0, 96], sizes = [16, 32], strides = [1, 1]} : vector<16x128xf32> to vector<16x32xf32>
    %342 = arith.negf %341 : vector<16x32xf32>
    %343 = math.exp %342 : vector<16x32xf32>
    %cst_95 = arith.constant 1.000000e+00 : f32
    %344 = vector.broadcast %cst_95 : f32 to vector<16x32xf32>
    %345 = arith.addf %344, %343 : vector<16x32xf32>
    %346 = arith.divf %344, %345 : vector<16x32xf32>
    %347 = arith.mulf %282, %340 : vector<16x32xf32>
    %348 = arith.mulf %332, %334 : vector<16x32xf32>
    %349 = arith.addf %347, %348 : vector<16x32xf32>
    %350 = math.tanh %349 : vector<16x32xf32>
    %351 = arith.mulf %346, %350 : vector<16x32xf32>
    %c3_i32 = arith.constant 3 : i32
    %352 = vector.broadcast %c3_i32 : i32 to vector<16x128xi32>
    %353 = arith.cmpi eq, %33, %352 : vector<16x128xi32>
    %354 = vector.broadcast %31 : vector<1x32xf32> to vector<16x32xf32>
    %355 = arith.mulf %351, %354 : vector<16x32xf32>
    %cst_96 = arith.constant dense<0.000000e+00> : vector<16xf32>
    %356 = vector.multi_reduction <add>, %355, %cst_96 [1] : vector<16x32xf32> to vector<16xf32>
    %357 = vector.shape_cast %356 : vector<16xf32> to vector<16x1xf32>
    %358 = vector.broadcast %32 : vector<1x1xf32> to vector<16x1xf32>
    %359 = arith.addf %357, %358 : vector<16x1xf32>
    %360 = vector.shape_cast %359 : vector<16x1xf32> to vector<16x1xf32>
    %361 = vector.broadcast %360 : vector<16x1xf32> to vector<16x128xf32>
    %362 = arith.select %353, %361, %293 : vector<16x128xi1>, vector<16x128xf32>
    %c0_97 = arith.constant 0 : index
    %c0_98 = arith.constant 0 : index
    %363 = vector.load %arg18[%c0_97, %c0_98] : memref<16x128xf32, #tpu.memory_space<vmem>>, vector<16x128xf32>
    tpu.vector_store %arg18[%c0_97, %c0_98], %362 {strides = array<i32>} : memref<16x128xf32, #tpu.memory_space<vmem>>, vector<16x128xf32>,
    return
  }
  func.func @transform_0(%arg0: i32) -> (i32, i32) {
    %c0_i32 = arith.constant 0 : i32
    %c0_i32_0 = arith.constant 0 : i32
    return %arg0, %c0_i32 : i32, i32
  }
  func.func @transform_1(%arg0: i32) -> (i32, i32) {
    %c0_i32 = arith.constant 0 : i32
    %c0_i32_0 = arith.constant 0 : i32
    return %arg0, %c0_i32 : i32, i32
  }
  func.func @transform_2(%arg0: i32) -> (i32, i32, i32) {
    %c0_i32 = arith.constant 0 : i32
    %c0_i32_0 = arith.constant 0 : i32
    %c0_i32_1 = arith.constant 0 : i32
    return %c0_i32, %arg0, %c0_i32_0 : i32, i32, i32
  }
  func.func @transform_3(%arg0: i32) -> (i32, i32) {
    %c0_i32 = arith.constant 0 : i32
    %c0_i32_0 = arith.constant 0 : i32
    %c0_i32_1 = arith.constant 0 : i32
    return %c0_i32, %c0_i32_0 : i32, i32
  }
  func.func @transform_4(%arg0: i32) -> (i32, i32) {
    %c0_i32 = arith.constant 0 : i32
    %c0_i32_0 = arith.constant 0 : i32
    %c0_i32_1 = arith.constant 0 : i32
    return %c0_i32, %c0_i32_0 : i32, i32
  }
  func.func @transform_5(%arg0: i32) -> (i32, i32) {
    %c0_i32 = arith.constant 0 : i32
    %c0_i32_0 = arith.constant 0 : i32
    %c0_i32_1 = arith.constant 0 : i32
    return %c0_i32, %c0_i32_0 : i32, i32
  }
  func.func @transform_6(%arg0: i32) -> (i32, i32) {
    %c0_i32 = arith.constant 0 : i32
    %c0_i32_0 = arith.constant 0 : i32
    %c0_i32_1 = arith.constant 0 : i32
    return %c0_i32, %c0_i32_0 : i32, i32
  }
  func.func @transform_7(%arg0: i32) -> (i32, i32) {
    %c0_i32 = arith.constant 0 : i32
    %c0_i32_0 = arith.constant 0 : i32
    %c0_i32_1 = arith.constant 0 : i32
    return %c0_i32, %c0_i32_0 : i32, i32
  }
  func.func @transform_8(%arg0: i32) -> (i32, i32) {
    %c0_i32 = arith.constant 0 : i32
    %c0_i32_0 = arith.constant 0 : i32
    %c0_i32_1 = arith.constant 0 : i32
    return %c0_i32, %c0_i32_0 : i32, i32
  }
  func.func @transform_9(%arg0: i32) -> (i32, i32) {
    %c0_i32 = arith.constant 0 : i32
    %c0_i32_0 = arith.constant 0 : i32
    %c0_i32_1 = arith.constant 0 : i32
    return %c0_i32, %c0_i32_0 : i32, i32
  }
  func.func @transform_10(%arg0: i32) -> (i32, i32) {
    %c0_i32 = arith.constant 0 : i32
    %c0_i32_0 = arith.constant 0 : i32
    %c0_i32_1 = arith.constant 0 : i32
    return %c0_i32, %c0_i32_0 : i32, i32
  }
  func.func @transform_11(%arg0: i32) -> (i32, i32) {
    %c0_i32 = arith.constant 0 : i32
    %c0_i32_0 = arith.constant 0 : i32
    %c0_i32_1 = arith.constant 0 : i32
    return %c0_i32, %c0_i32_0 : i32, i32
  }
  func.func @transform_12(%arg0: i32) -> (i32, i32) {
    %c0_i32 = arith.constant 0 : i32
    %c0_i32_0 = arith.constant 0 : i32
    %c0_i32_1 = arith.constant 0 : i32
    return %c0_i32, %c0_i32_0 : i32, i32
  }
  func.func @transform_13(%arg0: i32) -> (i32, i32) {
    %c0_i32 = arith.constant 0 : i32
    %c0_i32_0 = arith.constant 0 : i32
    %c0_i32_1 = arith.constant 0 : i32
    return %c0_i32, %c0_i32_0 : i32, i32
  }
  func.func @transform_14(%arg0: i32) -> (i32, i32) {
    %c0_i32 = arith.constant 0 : i32
    %c0_i32_0 = arith.constant 0 : i32
    %c0_i32_1 = arith.constant 0 : i32
    return %c0_i32, %c0_i32_0 : i32, i32
  }
  func.func @transform_15(%arg0: i32) -> (i32, i32) {
    %c0_i32 = arith.constant 0 : i32
    %c0_i32_0 = arith.constant 0 : i32
    %c0_i32_1 = arith.constant 0 : i32
    return %c0_i32, %c0_i32_0 : i32, i32
  }
  func.func @transform_16(%arg0: i32) -> (i32, i32, i32) {
    %c0_i32 = arith.constant 0 : i32
    %c0_i32_0 = arith.constant 0 : i32
    %c0_i32_1 = arith.constant 0 : i32
    return %arg0, %c0_i32, %c0_i32_0 : i32, i32, i32
  }
  func.func @transform_17(%arg0: i32) -> (i32, i32) {
    %c0_i32 = arith.constant 0 : i32
    %c0_i32_0 = arith.constant 0 : i32
    return %arg0, %c0_i32 : i32, i32
  }
}

</mosaic_0001>

<bundles_post_ra>
// kernel: tpu_custom_call.1
= control target key start
LH: loop header
LB: loop body
LE: loop exit
PB: predicated region body
PF: predicated region fallthrough
CT: control target
= control target key end

     0   :  { %s3234_s0 = inlined_call_operand.vmem [shape: f32[16,16], index: 0, kind: input, shape index: {}]   ;;  %s3235_s1 = inlined_call_operand.hbm [shape: f32[16,16], index: 1, kind: input, shape index: {}]   ;;  %s3236_s2 = inlined_call_operand.vmem [shape: f32[4,16,128], index: 2, kind: input, shape index: {}]   ;;  %s3237_s3 = inlined_call_operand.hbm [shape: f32[16,64], index: 3, kind: input, shape index: {}]   ;;  %s3238_s4 = inlined_call_operand.vmem [shape: f32[1,64], index: 4, kind: input, shape index: {}]   ;;  %s3239_s5 = inlined_call_operand.vmem [shape: f32[32,64], index: 5, kind: input, shape index: {}]   ;;  %s3240_s6 = inlined_call_operand.vmem [shape: f32[1,64], index: 6, kind: input, shape index: {}]   ;;  %s3241_s7 = inlined_call_operand.hbm [shape: f32[32,64], index: 7, kind: input, shape index: {}]   ;;  %s3242_s8 = inlined_call_operand.vmem [shape: f32[1,64], index: 8, kind: input, shape index: {}]   ;;  %s3243_s9 = inlined_call_operand.vmem [shape: f32[48,128], index: 9, kind: input, shape index: {}]   ;;  %s3244_s10 = inlined_call_operand.vmem [shape: f32[1,128], index: 10, kind: input, shape index: {}]   ;;  %s3245_s11 = inlined_call_operand.hbm [shape: f32[32,128], index: 11, kind: input, shape index: {}]   ;;  %s3246_s12 = inlined_call_operand.vmem [shape: f32[1,128], index: 12, kind: input, shape index: {}]   ;;  %s3247_s13 = inlined_call_operand.vmem [shape: f32[128,32], index: 13, kind: input, shape index: {}]   ;;  %s3248_s14 = inlined_call_operand.vmem [shape: f32[1,32], index: 14, kind: input, shape index: {}]   ;;  %s3249_s15 = inlined_call_operand.<no memory space> [shape: f32[1,1], index: 15, kind: input, shape index: {}]   ;;  %s3250_s16 = inlined_call_operand.hbm [shape: f32[16,4,128], index: 16, kind: output, shape index: {0}]   ;;  %s3251_s17 = inlined_call_operand.hbm [shape: f32[16,128], index: 17, kind: output, shape index: {1}]  }
   0x1   :  { %3253 = sst [smem:[#allocation19_spill]] %s3234_s0  ;;  %v23_v0 = vstv %s3249_s15 }
   0x2   :  { %3254 = sst [smem:[#allocation20_spill]] %s3235_s1  ;;  %24 = vst [vmem:[#allocation2] sm:$0x1] %v23_v0 }
   0x3   :  { %25 = vsyncpa [#allocation4], 0 }
   0x4   :  { %26 = vsyncpa [#allocation7], 0 }
   0x5   :  { %27 = vsyncpa [#allocation10], 0 }
   0x6   :  { %28 = vsyncpa [#allocation5], 0 }
   0x7   :  { %29 = vsyncpa [#allocation13], 0  ;;  %s51_s28 = sshll.u32 %s3237_s3, 4  ;;  %s2368_s29 = smov [#allocation6]   ;;  %s52_s28 = int_to_ptr.hbm [resolvable:$true] %s51_s28 }
   0x8   :  { %s53_s0 = sshll.u32 %s2368_s29, 4  ;;  %s3255_s19 = sld [smem:[#allocation20_spill]]  ;;  %s54_s0 = int_to_ptr.vmem [resolvable:$true] %s53_s0 }
   0x9   :  { %s2369_s20 = smov 128   ;;  %s2370_s15 = smov 8  }
   0xa   :  { %59 = dma.hbm_to_vmem [thread:$0]  %s52_s28, 256, %s54_s0, [#allocation7], %s2369_s20, %s2369_s20, %s2370_s15  }
   0xb   :  { %s2371_s21 = smov [#allocation3]   ;;  %s70_s3 = sshll.u32 %s3241_s7, 4  ;;  %s71_s3 = int_to_ptr.hbm [resolvable:$true] %s70_s3 }
   0xc   :  { %s38_s22 = sshll.u32 %s2371_s21, 4  ;;  %s89_s27 = sshll.u32 %s3245_s11, 4  ;;  %s39_s22 = int_to_ptr.vmem [resolvable:$true] %s38_s22  ;;  %s90_s27 = int_to_ptr.hbm [resolvable:$true] %s89_s27 }
   0xd   :  { %s2372_s29 = smov [#allocation8]   ;;  %s2373_s28 = smov [#allocation9]  }
   0xe   :  { %s36_s1 = sshll.u32 %s3255_s19, 4  ;;  %s72_s30 = sshll.u32 %s2372_s29, 4  ;;  %s37_s1 = int_to_ptr.hbm [resolvable:$true] %s36_s1  ;;  %s73_s30 = int_to_ptr.vmem [resolvable:$true] %s72_s30 }
   0xf   :  { %44 = dma.hbm_to_vmem [thread:$0]  %s37_s1, 256, %s39_s22, [#allocation4], %s2369_s20, %s2369_s20, %s2370_s15  }
  0x10   :  { %78 = dma.hbm_to_vmem [thread:$0]  %s71_s3, 512, %s73_s30, [#allocation7], %s2369_s20, %s2369_s20, %s2370_s15  }
  0x11   :  { %s91_s7 = sshll.u32 %s2373_s28, 4  ;;  %s92_s7 = int_to_ptr.vmem [resolvable:$true] %s91_s7 }
  0x12   :  { %97 = dma.hbm_to_vmem [thread:$0]  %s90_s27, 512, %s92_s7, [#allocation10], %s2369_s20, %s2369_s20, %s2370_s15  }
  0x13   :  { %2358 = dma.done.wait [#allocation4], 256  }
  0x14   :  { %2359 = vsyncadd [#allocation4], 4294967040 }
  0x15   :  { %2360 = dma.done.wait [#allocation7], 768  }
  0x16   :  { %2361 = vsyncadd [#allocation7], 4294966528 }
  0x17   :  { %2362 = dma.done.wait [#allocation10], 512  }
  0x18   :  { %2363 = vsyncadd [#allocation10], 4294966784  ;;  %v127_v1 = vld [vmem:[#allocation6 + $0x8] sm:$0xff]  ;;  %v126_v2 = vld [vmem:[#allocation6] sm:$0xff]  ;;  %s3256_s18 = sld [smem:[#allocation19_spill]]  ;;  %vm132_vm0 = vcmask 130048  }
  0x19   :  { %153 = vmatpush.msra.mxu0 %v127_v1  ;;  %2011 = vmatpush.msra.mxu1 %v127_v1  ;;  %v167_v5 = vld [vmem:[%s3239_s5 + $0x18] sm:$0xff]  ;;  %v166_v6 = vld [vmem:[%s3239_s5 + $0x10] sm:$0xff]  ;;  %v165_v7 = vld [vmem:[%s3239_s5 + $0x8] sm:$0xff]  ;;  %vm172_vm1 = vcmask 261120   ;;  %s2374_s24 = smov 16   ;;  %vm290_vm2 = vcmask 392192  }
  0x1a   :  { %v164_v8 = vld [vmem:[%s3239_s5] sm:$0xff]  ;;  %v2536_v16 = vld [vmem:[%s3243_s9 + $0x28] sm:$0xff]  ;;  %v2547_v18 = vld [vmem:[%s3243_s9 + $0x18] sm:$0xff]  ;;  %s2376_s27 = smov 32   ;;  %s2377_s29 = smov 64  }
  0x1b   :  { %154 = vmatpush.msra.mxu0 %v126_v2  ;;  %2012 = vmatpush.msra.mxu1 %v126_v2  ;;  %v2033_v9 = vld [vmem:[%s3238_s4] ss:$0 sm:$0xff]  ;;  %v2553_v19 = vld [vmem:[%s3243_s9 + $0x10] sm:$0xff]  ;;  %v2559_v20 = vld [vmem:[%s3243_s9 + $0x8] sm:$0xff]  ;;  %s2378_s0 = smov 48  }
  0x1c   :  { %v2541_v17 = vld [vmem:[%s3243_s9 + $0x20] sm:$0xff]  ;;  %307 = vmatpush.msra.mxu3 %v2536_v16  ;;  %v125_v32 = vld [vmem:[#allocation3 + $0x8] sm:$0xff] }
  0x1d   :  { %191 = vmatpush.msrb.mxu1 %v167_v5  ;;  %v2034_v21 = vld [vmem:[%s3240_s6] ss:$0 sm:$0xff]  ;;  %v124_v29 = vld [vmem:[#allocation3] sm:$0xff] }
  0x1e   :  { %v122_v3 = vld [vmem:[%s3256_s18] sm:$0xff]  ;;  %v123_v4 = vld [vmem:[%s3256_s18 + $0x8] sm:$0xff]  ;;  %308 = vmatpush.msra.mxu3 %v2541_v17  ;;  %s1931_s18 = sshll.u32 %s3251_s17, 4  ;;  %s1932_s18 = int_to_ptr.hbm [resolvable:$true] %s1931_s18 }
  0x1f   :  { %1951 = vmatmul.msk.f32.vlgmr.msra.gmra.mxu0 %vm132_vm0, %v122_v3  ;;  %1952 = vmatmul.msk.f32.vlgmr.msra.gmra.mxu1 %vm132_vm0, %v123_v4  ;;  %v2575_v28 = vld [vmem:[%s3243_s9] sm:$0xff]  ;;  %s2375_s9 = smov 96  }
  0x20   :  { %192 = vmatpush.msrb.mxu1 %v166_v6  ;;  %309 = vmatpush.msra.mxu3 %v2547_v18  ;;  %v2585_v35 = vld [vmem:[%s3244_s10] ss:$0 sm:$0xff] }
  0x22   :  { %193 = vmatpush.msrb.mxu1 %v165_v7  ;;  %310 = vmatpush.msra.mxu3 %v2553_v19 }
  0x24   :  { %194 = vmatpush.msrb.mxu1 %v164_v8  ;;  %311 = vmatpush.msra.mxu3 %v2559_v20 }
  0x26   :  { %312 = vmatpush.msra.mxu3 %v2575_v28 }
  0x9c   :  { %v156_v10 = vpop.f32.mrf.mxu0  ;;  %v159_v12 = vpop.f32.mrf.mxu1 }
  0x9d   :  { %v157_v11 = vadd.f32 %v2033_v9, %v156_v10  ;;  %v160_v13 = vadd.f32 %v2033_v9, %v159_v12 }
  0x9f   :  { %2040 = vtanh.f32 %v157_v11 }
  0xa0   :  { %2042 = vtanh.f32 %v160_v13 }
  0xa5   :  { %v2525_v14 = vpop.eup %2040 }
  0xa6   :  { %1953 = vmatmul.msk.f32.vlgmr.msrb.gmra.mxu1 %vm172_vm1, %v2525_v14  ;;  %v2529_v15 = vpop.eup %2042 }
  0xae   :  { %1954 = vmatmul.msk.f32.gmra.mxu1 %vm172_vm1, %v2529_v15 }
 0x123   :  { %v196_v22 = vpop.f32.mrf.mxu1 }
 0x124   :  { %v197_v23 = vadd.f32 %v2034_v21, %v196_v22 }
 0x126   :  { %2044 = vtanh.f32 %v197_v23 }
 0x12b   :  { %v199_v24 = vpop.f32.mrf.mxu1 }
 0x12c   :  { %v2566_v25 = vpop.eup %2044  ;;  %v200_v26 = vadd.f32 %v2034_v21, %v199_v24 }
 0x12d   :  { %279 = vrot.lane.b32.xlu0 %v2566_v25, %s2374_s24 }
 0x12e   :  { %2046 = vtanh.f32 %v200_v26 }
 0x134   :  { %v2569_v27 = vpop.eup %2046 }
 0x135   :  { %281 = vrot.lane.b32.xlu0 %v2569_v27, %s2374_s24 }
 0x19f   :  { %v280_v30 = vpop.permute.xlu0 %279 }
 0x1a0   :  { %v285_v31 = vsel %vm132_vm0, %v124_v29, %v280_v30  ;;  %v2609_v29 = vld [vmem:[#allocation9 + $0x18] sm:$0xff]  ;;  %v2611_v30 = vld [vmem:[#allocation9 + $0x10] sm:$0xff] }
 0x1a1   :  { %1957 = vmatmul.msk.f32.vlgmr.msra.gmra.mxu3 %vm290_vm2, %v285_v31  ;;  %427 = vmatpush.msrb.mxu0 %v2609_v29  ;;  %v2619_v31 = vld [vmem:[#allocation9] sm:$0xff] }
 0x1a2   :  { %837 = vmatpush.msrb.mxu3 %v2609_v29 }
 0x1a3   :  { %428 = vmatpush.msrb.mxu0 %v2611_v30 }
 0x1a4   :  { %838 = vmatpush.msrb.mxu3 %v2611_v30 }
 0x1a7   :  { %v282_v33 = vpop.permute.xlu0 %281 }
 0x1a8   :  { %v286_v34 = vsel %vm132_vm0, %v125_v32, %v282_v33 }
 0x1a9   :  { %1958 = vmatmul.msk.f32.gmra.mxu3 %vm290_vm2, %v286_v34 }
 0x224   :  { %v314_v36 = vpop.f32.mrf.mxu3 }
 0x225   :  { %v315_v37 = vadd.f32 %v2585_v35, %v314_v36 }
 0x227   :  { %v1959_v38 = vmul.f32 -1.442695, %v315_v37  ;;  %2048 = vtanh.f32 %v315_v37  ;;  %v2637_v37 = vld [vmem:[%s3246_s12] ss:$0 sm:$0xff] }
 0x229   :  { %2050 = vpow2.f32 %v1959_v38 }
 0x22c   :  { %v317_v39 = vpop.f32.mrf.mxu3 }
 0x22d   :  { %v2049_v40 = vpop.eup %2048  ;;  %v318_v41 = vadd.f32 %v2585_v35, %v317_v39  ;;  %v438_v39 = vld [vmem:[%s3236_s2] sm:$0xff] }
 0x22e   :  { %372 = vrot.lane.b32.xlu1 %v2049_v40, %s2375_s9 }
 0x22f   :  { %v2051_v42 = vpop.eup %2050  ;;  %v1960_v43 = vmul.f32 -1.442695, %v318_v41  ;;  %2052 = vtanh.f32 %v318_v41 }
 0x230   :  { %v326_v44 = vadd.f32 1.0, %v2051_v42 }
 0x231   :  { %2054 = vpow2.f32 %v1960_v43 }
 0x232   :  { %2056 = vrcp.f32 %v326_v44  ;;  %v339_v51 = vand.u32 2147483648, %v326_v44  ;;  %v337_v53 = vand.u32 2147483647, %v326_v44  ;;  %vm333_vm4 = vweird.f32 %v326_v44 }
 0x234   :  { %v340_v56 = vor.u32 1.1754944e-38, %v339_v51  ;;  %vm338_vm6 = vcmp.eq.f32.partialorder %v337_v53, 8.507059e+37 }
 0x235   :  { %v2053_v45 = vpop.eup %2052 }
 0x236   :  { %374 = vrot.lane.b32.xlu1 %v2053_v45, %s2375_s9 }
 0x237   :  { %v2055_v46 = vpop.eup %2054 }
 0x238   :  { %v2057_v47 = vpop.eup %2056  ;;  %v327_v48 = vadd.f32 1.0, %v2055_v46 }
 0x239   :  { %v329_v49 = vmul.f32 %v2057_v47, %v326_v44  ;;  %vm334_vm3 = vweird.f32 %v2057_v47  ;;  %v439_v44 = vld [vmem:[%s3236_s2 + $0x8] sm:$0xff] }
 0x23a   :  { %2058 = vrcp.f32 %v327_v48  ;;  %vm335_vm5 = vmor %vm333_vm4, %vm334_vm3  ;;  %v354_v60 = vand.u32 2147483648, %v327_v48  ;;  %vm348_vm7 = vweird.f32 %v327_v48  ;;  %v352_v62 = vand.u32 2147483647, %v327_v48 }
 0x23b   :  { %v330_v50 = vsub.f32 1.0, %v329_v49  ;;  %v205_v49 = vld [vmem:[#allocation8 + $0x8] sm:$0xff] }
 0x23c   :  { %v355_v0 = vor.u32 1.1754944e-38, %v354_v60  ;;  %vm353_vm10 = vcmp.eq.f32.partialorder %v352_v62, 8.507059e+37  ;;  %v2691_v60 = vld [vmem:[%s3247_s13 + $0x68] sm:$0xff]  ;;  %v2707_v62 = vld [vmem:[%s3247_s13 + $0x58] sm:$0xff] }
 0x23d   :  { %v331_v52 = vmul.f32 %v2057_v47, %v330_v50  ;;  %v204_v50 = vld [vmem:[#allocation8] sm:$0xff] }
 0x23f   :  { %v332_v54 = vadd.f32 %v2057_v47, %v331_v52 }
 0x240   :  { %v2059_v55 = vpop.eup %2058 }
 0x241   :  { %v336_v57 = vsel %vm335_vm5, %v2057_v47, %v332_v54  ;;  %v344_v58 = vmul.f32 %v2059_v55, %v327_v48  ;;  %vm349_vm8 = vweird.f32 %v2059_v55  ;;  %v207_v48 = vld [vmem:[#allocation8 + $0x18] sm:$0xff] }
 0x242   :  { %v341_v59 = vsel %vm338_vm6, %v340_v56, %v336_v57  ;;  %vm350_vm9 = vmor %vm348_vm7, %vm349_vm8  ;;  %232 = vmatpush.msra.mxu2 %v207_v48 }
 0x243   :  { %362 = vrot.lane.b32.xlu2 %v341_v59, %s2375_s9  ;;  %v345_v61 = vsub.f32 1.0, %v344_v58  ;;  %v2679_v58 = vld [vmem:[%s3247_s13 + $0x78] sm:$0xff] }
 0x244   :  { %518 = vmatpush.msra.mxu1 %v2679_v58 }
 0x245   :  { %v346_v63 = vmul.f32 %v2059_v55, %v345_v61  ;;  %v2699_v61 = vld [vmem:[%s3247_s13 + $0x60] sm:$0xff] }
 0x247   :  { %v347_v1 = vadd.f32 %v2059_v55, %v346_v63 }
 0x249   :  { %v351_v2 = vsel %vm350_vm9, %v2059_v55, %v347_v1  ;;  %v2726_v1 = vld [vmem:[%s3247_s13 + $0x48] sm:$0xff] }
 0x24a   :  { %v356_v3 = vsel %vm353_vm10, %v355_v0, %v351_v2  ;;  %v2718_v0 = vld [vmem:[%s3247_s13 + $0x50] sm:$0xff]  ;;  %v2734_v2 = vld [vmem:[%s3247_s13 + $0x40] sm:$0xff] }
 0x24b   :  { %364 = vrot.lane.b32.xlu0 %v356_v3, %s2375_s9 }
 0x29d   :  { %v363_v8 = vpop.permute.xlu2 %362 }
 0x29e   :  { %v368_v9 = vmul.f32 %v2566_v25, %v363_v8  ;;  %v2780_v8 = vld [vmem:[%s3247_s13 + $0x18] sm:$0xff] }
 0x2a0   :  { %v373_v4 = vpop.permute.xlu1 %372 }
 0x2a1   :  { %v378_v5 = vmul.f32 %v373_v4, %v341_v59 }
 0x2a3   :  { %382 = vrot.lane.b32.xlu2 %v378_v5, %s2376_s27  ;;  %v2757_v5 = vld [vmem:[%s3247_s13 + $0x30] sm:$0xff] }
 0x2a8   :  { %v375_v6 = vpop.permute.xlu1 %374 }
 0x2a9   :  { %v379_v7 = vmul.f32 %v375_v6, %v356_v3  ;;  %v2764_v6 = vld [vmem:[%s3247_s13 + $0x28] sm:$0xff] }
 0x2ab   :  { %384 = vrot.lane.b32.xlu1 %v379_v7, %s2376_s27  ;;  %v2772_v7 = vld [vmem:[%s3247_s13 + $0x20] sm:$0xff] }
 0x2bd   :  { %v365_v13 = vpop.permute.xlu0 %364 }
 0x2be   :  { %v369_v21 = vmul.f32 %v2569_v27, %v365_v13  ;;  %v2615_v27 = vld [vmem:[#allocation9 + $0x8] sm:$0xff] }
 0x2bf   :  { %429 = vmatpush.msrb.mxu0 %v2615_v27  ;;  %839 = vmatpush.msrb.mxu3 %v2615_v27 }
 0x2c1   :  { %430 = vmatpush.msrb.mxu0 %v2619_v31  ;;  %840 = vmatpush.msrb.mxu3 %v2619_v31 }
 0x2c3   :  { %1000 = vmatpush.msra.mxu3 %v2536_v16  ;;  %929 = vmatpush.msra.mxu0 %v2679_v58 }
 0x2c5   :  { %1001 = vmatpush.msra.mxu3 %v2541_v17 }
 0x2c7   :  { %1002 = vmatpush.msra.mxu3 %v2547_v18 }
 0x2c9   :  { %1003 = vmatpush.msra.mxu3 %v2553_v19 }
 0x2cb   :  { %1004 = vmatpush.msra.mxu3 %v2559_v20 }
 0x2cd   :  { %1005 = vmatpush.msra.mxu3 %v2575_v28 }
 0x2fd   :  { %v383_v10 = vpop.permute.xlu2 %382 }
 0x2fe   :  { %v2596_v11 = vadd.f32 %v383_v10, %v368_v9  ;;  %v2788_v9 = vld [vmem:[%s3247_s13 + $0x10] sm:$0xff]  ;;  %v2796_v10 = vld [vmem:[%s3247_s13 + $0x8] sm:$0xff] }
 0x300   :  { %2060 = vtanh.f32 %v2596_v11 }
 0x306   :  { %v2061_v12 = vpop.eup %2060 }
 0x307   :  { %394 = vrot.lane.b32.xlu2 %v2061_v12, %s2377_s29  ;;  %v2804_v12 = vld [vmem:[%s3247_s13] sm:$0xff] }
 0x31d   :  { %v385_v22 = vpop.permute.xlu1 %384 }
 0x31e   :  { %v2601_v23 = vadd.f32 %v385_v22, %v369_v21 }
 0x320   :  { %2062 = vtanh.f32 %v2601_v23 }
 0x326   :  { %v2063_v24 = vpop.eup %2062 }
 0x327   :  { %396 = vrot.lane.b32.xlu0 %v2063_v24, %s2377_s29  ;;  %v2379_v24 = vmov 0.0  }
 0x361   :  { %v395_v25 = vpop.permute.xlu2 %394 }
 0x362   :  { %v2605_v26 = vmul.f32 %v395_v25, %v341_v59  ;;  %v2684_v59 = vld [vmem:[%s3247_s13 + $0x70] sm:$0xff] }
 0x363   :  { %519 = vmatpush.msra.mxu1 %v2684_v59  ;;  %930 = vmatpush.msra.mxu0 %v2684_v59 }
 0x364   :  { %407 = vrot.lane.b32.xlu1 %v2605_v26, %s2376_s27 }
 0x365   :  { %520 = vmatpush.msra.mxu1 %v2691_v60  ;;  %931 = vmatpush.msra.mxu0 %v2691_v60 }
 0x367   :  { %521 = vmatpush.msra.mxu1 %v2699_v61  ;;  %932 = vmatpush.msra.mxu0 %v2699_v61 }
 0x369   :  { %522 = vmatpush.msra.mxu1 %v2707_v62  ;;  %933 = vmatpush.msra.mxu0 %v2707_v62 }
 0x36b   :  { %523 = vmatpush.msra.mxu1 %v2718_v0  ;;  %934 = vmatpush.msra.mxu0 %v2718_v0 }
 0x36d   :  { %524 = vmatpush.msra.mxu1 %v2726_v1  ;;  %935 = vmatpush.msra.mxu0 %v2726_v1 }
 0x36f   :  { %525 = vmatpush.msra.mxu1 %v2734_v2  ;;  %936 = vmatpush.msra.mxu0 %v2734_v2 }
 0x399   :  { %v397_v32 = vpop.permute.xlu0 %396 }
 0x39a   :  { %v401_v33 = vmul.f32 %v397_v32, %v356_v3  ;;  %v2742_v3 = vld [vmem:[%s3247_s13 + $0x38] sm:$0xff]  ;;  %s2383_s13 = smov 4  }
 0x39b   :  { %526 = vmatpush.msra.mxu1 %v2742_v3  ;;  %937 = vmatpush.msra.mxu0 %v2742_v3 }
 0x39c   :  { %409 = vrot.lane.b32.xlu2 %v401_v33, %s2376_s27 }
 0x39d   :  { %527 = vmatpush.msra.mxu1 %v2757_v5  ;;  %938 = vmatpush.msra.mxu0 %v2757_v5 }
 0x39f   :  { %528 = vmatpush.msra.mxu1 %v2764_v6  ;;  %939 = vmatpush.msra.mxu0 %v2764_v6 }
 0x3a1   :  { %529 = vmatpush.msra.mxu1 %v2772_v7  ;;  %940 = vmatpush.msra.mxu0 %v2772_v7 }
 0x3a3   :  { %530 = vmatpush.msra.mxu1 %v2780_v8  ;;  %941 = vmatpush.msra.mxu0 %v2780_v8 }
 0x3a5   :  { %531 = vmatpush.msra.mxu1 %v2788_v9  ;;  %942 = vmatpush.msra.mxu0 %v2788_v9 }
 0x3a7   :  { %532 = vmatpush.msra.mxu1 %v2796_v10  ;;  %943 = vmatpush.msra.mxu0 %v2796_v10 }
 0x3a9   :  { %533 = vmatpush.msra.mxu1 %v2804_v12  ;;  %944 = vmatpush.msra.mxu0 %v2804_v12 }
 0x3ab   :  { %1236 = vmatpush.msrb.mxu1 %v2609_v29 }
 0x3ad   :  { %1237 = vmatpush.msrb.mxu1 %v2611_v30 }
 0x3af   :  { %1238 = vmatpush.msrb.mxu1 %v2615_v27 }
 0x3b1   :  { %1239 = vmatpush.msrb.mxu1 %v2619_v31 }
 0x3d6   :  { %v408_v34 = vpop.permute.xlu1 %407 }
 0x3d7   :  { %1961 = vmatmul.msk.f32.vlgmr.msrb.gmra.mxu0 %vm172_vm1, %v408_v34 }
 0x3d8   :  { %1399 = vmatpush.msrb.mxu0 %v2536_v16 }
 0x3da   :  { %1400 = vmatpush.msrb.mxu0 %v2541_v17 }
 0x3dc   :  { %1401 = vmatpush.msrb.mxu0 %v2547_v18 }
 0x3de   :  { %1402 = vmatpush.msrb.mxu0 %v2553_v19 }
 0x3e0   :  { %1403 = vmatpush.msrb.mxu0 %v2559_v20 }
 0x3e2   :  { %1404 = vmatpush.msrb.mxu0 %v2575_v28 }
 0x3f6   :  { %v410_v36 = vpop.permute.xlu2 %409 }
 0x3f7   :  { %1962 = vmatmul.msk.f32.gmra.mxu0 %vm172_vm1, %v410_v36 }
 0x454   :  { %v432_v38 = vpop.f32.mrf.mxu0 }
 0x455   :  { %v433_v40 = vadd.f32 %v2637_v37, %v432_v38 }
 0x457   :  { %v440_v41 = vadd.f32 %v438_v39, %v433_v40 }
 0x459   :  { %v2643_v42 = vmul.f32 1.1111112, %v440_v41 }
 0x45b   :  { %444 = vmax.xlane.f32.xlu0 %v2643_v42 }
 0x46f   :  { %212 = vrot.lane.b32.xlu0 %v2525_v14, %s2375_s9  ;;  %v206_v14 = vld [vmem:[#allocation8 + $0x10] sm:$0xff] }
 0x470   :  { %233 = vmatpush.msra.mxu2 %v206_v14 }
 0x472   :  { %234 = vmatpush.msra.mxu2 %v205_v49 }
 0x474   :  { %v435_v43 = vpop.f32.mrf.mxu0  ;;  %235 = vmatpush.msra.mxu2 %v204_v50 }
 0x475   :  { %v436_v45 = vadd.f32 %v2637_v37, %v435_v43 }
 0x476   :  { %593 = vmatpush.msrb.mxu2 %v2536_v16 }
 0x477   :  { %v441_v46 = vadd.f32 %v439_v44, %v436_v45  ;;  %557 = vrot.lane.b32.xlu0 %v401_v33, %s2378_s0 }
 0x478   :  { %594 = vmatpush.msrb.mxu2 %v2541_v17 }
 0x479   :  { %v2653_v47 = vmul.f32 1.1111112, %v441_v46 }
 0x47a   :  { %595 = vmatpush.msrb.mxu2 %v2547_v18 }
 0x47b   :  { %446 = vmax.xlane.f32.xlu1 %v2653_v47 }
 0x47c   :  { %596 = vmatpush.msrb.mxu2 %v2553_v19 }
 0x47e   :  { %597 = vmatpush.msrb.mxu2 %v2559_v20 }
 0x480   :  { %598 = vmatpush.msrb.mxu2 %v2575_v28 }
 0x494   :  { %214 = vrot.lane.b32.xlu1 %v2529_v15, %s2375_s9 }
 0x4ce   :  { %v2664_v15 = vpop.xlane.xlu0 %444 }
 0x4cf   :  { %v448_v51 = vsub.f32 %v2643_v42, %v2664_v15  ;;  %vm462_vm11 = vcmp.eq.f32.partialorder %v2643_v42, %v2664_v15 }
 0x4d0   :  { %v1963_v25 = vsel %vm462_vm11, 1.0, %v2379_v24 }
 0x4d1   :  { %v450_v52 = vmul.f32 1.442695, %v448_v51 }
 0x4d3   :  { %2064 = vpow2.f32 %v450_v52 }
 0x4d9   :  { %v2668_v53 = vpop.eup %2064 }
 0x4da   :  { %454 = vadd.xlane.f32.xlu2 %v2668_v53 }
 0x4e1   :  { %v213_v54 = vpop.permute.xlu0 %212 }
 0x4e2   :  { %1955 = vmatmul.msk.f32.vlgmr.msra.gmra.mxu2 %vm172_vm1, %v213_v54 }
 0x4e3   :  { %1328 = vmatpush.msra.mxu2 %v2679_v58 }
 0x4e5   :  { %1329 = vmatpush.msra.mxu2 %v2684_v59 }
 0x4e7   :  { %1330 = vmatpush.msra.mxu2 %v2691_v60 }
 0x4e9   :  { %1331 = vmatpush.msra.mxu2 %v2699_v61  ;;  %v558_v52 = vpop.permute.xlu0 %557 }
 0x4eb   :  { %1332 = vmatpush.msra.mxu2 %v2707_v62 }
 0x4ed   :  { %1333 = vmatpush.msra.mxu2 %v2718_v0 }
 0x4ee   :  { %v2672_v55 = vpop.xlane.xlu1 %446 }
 0x4ef   :  { %v449_v56 = vsub.f32 %v2653_v47, %v2672_v55  ;;  %1334 = vmatpush.msra.mxu2 %v2726_v1  ;;  %vm463_vm12 = vcmp.eq.f32.partialorder %v2653_v47, %v2672_v55 }
 0x4f1   :  { %v452_v57 = vmul.f32 1.442695, %v449_v56  ;;  %1335 = vmatpush.msra.mxu2 %v2734_v2 }
 0x4f3   :  { %2066 = vpow2.f32 %v452_v57  ;;  %1336 = vmatpush.msra.mxu2 %v2742_v3 }
 0x4f5   :  { %1337 = vmatpush.msra.mxu2 %v2757_v5 }
 0x4f7   :  { %1338 = vmatpush.msra.mxu2 %v2764_v6 }
 0x4f9   :  { %v2710_v63 = vpop.eup %2066  ;;  %1339 = vmatpush.msra.mxu2 %v2772_v7 }
 0x4fa   :  { %456 = vadd.xlane.f32.xlu2 %v2710_v63 }
 0x4fb   :  { %1340 = vmatpush.msra.mxu2 %v2780_v8 }
 0x4fd   :  { %1341 = vmatpush.msra.mxu2 %v2788_v9 }
 0x4ff   :  { %1342 = vmatpush.msra.mxu2 %v2796_v10 }
 0x501   :  { %1343 = vmatpush.msra.mxu2 %v2804_v12 }
 0x506   :  { %v215_v4 = vpop.permute.xlu1 %214 }
 0x507   :  { %1956 = vmatmul.msk.f32.gmra.mxu2 %vm172_vm1, %v215_v4 }
 0x512   :  { %555 = vrot.lane.b32.xlu2 %v2605_v26, %s2378_s0 }
 0x54d   :  { %v455_v13 = vpop.xlane.xlu2 %454 }
 0x54e   :  { %2068 = vrcp.f32 %v455_v13 }
 0x554   :  { %v2069_v21 = vpop.eup %2068 }
 0x555   :  { %v460_v22 = vmul.f32 %v2069_v21, %v2668_v53 }
 0x557   :  { %v468_v26 = vsub.f32 %v1963_v25, %v460_v22 }
 0x559   :  { %v470_v32 = vadd.f32 %v468_v26, %v460_v22 }
 0x55b   :  { %v474_v33 = vrot.slane %v470_v32, 1  ;;  %v475_v34 = vrot.slane %v470_v32, 2  ;;  %v476_v36 = vrot.slane %v470_v32, 3  ;;  %502 = vst [vmem:[#allocation11] sm:$0x1] %v470_v32  ;;  %534 = vmatmul.f32.vlgmr.msra.gmra.mxu1 %v470_v32  ;;  %v477_v38 = vrot.slane %v470_v32, 4 }
 0x55c   :  { %1635 = vmatpush.msra.mxu1 %v2609_v29  ;;  %v478_v39 = vrot.slane %v470_v32, 5  ;;  %v479_v40 = vrot.slane %v470_v32, 6  ;;  %v480_v41 = vrot.slane %v470_v32, 7 }
 0x55d   :  { %503 = vst [vmem:[#allocation11 + $0x4] sm:$0x1] %v474_v33 }
 0x55e   :  { %504 = vst [vmem:[#allocation11 + $0x8] sm:$0x1] %v475_v34  ;;  %1636 = vmatpush.msra.mxu1 %v2611_v30  ;;  %v1964_v30 = vsel %vm463_vm12, 1.0, %v2379_v24 }
 0x55f   :  { %505 = vst [vmem:[#allocation11 + $0xc] sm:$0x1] %v476_v36 }
 0x560   :  { %506 = vst [vmem:[#allocation11 + $0x10] sm:$0x1] %v477_v38  ;;  %1637 = vmatpush.msra.mxu1 %v2615_v27 }
 0x561   :  { %507 = vst [vmem:[#allocation11 + $0x14] sm:$0x1] %v478_v39 }
 0x562   :  { %508 = vst [vmem:[#allocation11 + $0x18] sm:$0x1] %v479_v40  ;;  %1638 = vmatpush.msra.mxu1 %v2619_v31 }
 0x563   :  { %509 = vst [vmem:[#allocation11 + $0x1c] sm:$0x1] %v480_v41 }
 0x565   :  { %v2848_v55 = vpop.f32.mrf.mxu2 }
 0x56d   :  { %v457_v42 = vpop.xlane.xlu2 %456 }
 0x56e   :  { %2070 = vrcp.f32 %v457_v42 }
 0x574   :  { %v2071_v29 = vpop.eup %2070 }
 0x575   :  { %v461_v43 = vmul.f32 %v2071_v29, %v2710_v63  ;;  %v556_v47 = vpop.permute.xlu2 %555 }
 0x577   :  { %v469_v44 = vsub.f32 %v1964_v30, %v461_v43 }
 0x579   :  { %v471_v45 = vadd.f32 %v469_v44, %v461_v43 }
 0x57b   :  { %v481_v46 = vrot.slane %v471_v45, 1  ;;  %v482_v48 = vrot.slane %v471_v45, 2  ;;  %v483_v27 = vrot.slane %v471_v45, 3  ;;  %510 = vst [vmem:[#allocation11 + $0x20] sm:$0x1] %v471_v45  ;;  %537 = vmatmul.f32.gmra.mxu1 %v471_v45  ;;  %v484_v14 = vrot.slane %v471_v45, 4 }
 0x57c   :  { %v485_v31 = vrot.slane %v471_v45, 5  ;;  %v486_v49 = vrot.slane %v471_v45, 6  ;;  %v487_v50 = vrot.slane %v471_v45, 7 }
 0x57d   :  { %511 = vst [vmem:[#allocation11 + $0x24] sm:$0x1] %v481_v46 }
 0x57e   :  { %512 = vst [vmem:[#allocation11 + $0x28] sm:$0x1] %v482_v48 }
 0x57f   :  { %513 = vst [vmem:[#allocation11 + $0x2c] sm:$0x1] %v483_v27 }
 0x580   :  { %514 = vst [vmem:[#allocation11 + $0x30] sm:$0x1] %v484_v14 }
 0x581   :  { %515 = vst [vmem:[#allocation11 + $0x34] sm:$0x1] %v485_v31 }
 0x582   :  { %516 = vst [vmem:[#allocation11 + $0x38] sm:$0x1] %v486_v49 }
 0x583   :  { %517 = vst [vmem:[#allocation11 + $0x3c] sm:$0x1] %v487_v50 }
 0x5d8   :  { %v2832_v15 = vpop.f32.mrf.mxu1 }
 0x5d9   :  { %v567_v51 = vsel %vm132_vm0, %v2832_v15, %v556_v47 }
 0x5da   :  { %1965 = vmatmul.msk.f32.vlgmr.msrb.gmra.mxu2 %vm290_vm2, %v567_v51 }
 0x5db   :  { %1784 = vmatpush.msrb.mxu2 %v2536_v16  ;;  %v2850_v16 = vpop.f32.mrf.mxu2 }
 0x5dd   :  { %1785 = vmatpush.msrb.mxu2 %v2541_v17 }
 0x5df   :  { %1786 = vmatpush.msrb.mxu2 %v2547_v18 }
 0x5e1   :  { %1787 = vmatpush.msrb.mxu2 %v2553_v19 }
 0x5e3   :  { %1788 = vmatpush.msrb.mxu2 %v2559_v20 }
 0x5e5   :  { %1789 = vmatpush.msrb.mxu2 %v2575_v28 }
 0x5f8   :  { %v2843_v53 = vpop.f32.mrf.mxu1 }
 0x5f9   :  { %v568_v54 = vsel %vm132_vm0, %v2843_v53, %v558_v52 }
 0x5fa   :  { %1966 = vmatmul.msk.f32.gmra.mxu2 %vm290_vm2, %v568_v54 }
 0x65d   :  { %v600_v17 = vpop.f32.mrf.mxu2 }
 0x65e   :  { %v601_v18 = vadd.f32 %v2585_v35, %v600_v17 }
 0x660   :  { %v1969_v19 = vmul.f32 -1.442695, %v601_v18  ;;  %2072 = vtanh.f32 %v601_v18 }
 0x662   :  { %2074 = vpow2.f32 %v1969_v19 }
 0x666   :  { %v2073_v20 = vpop.eup %2072 }
 0x667   :  { %716 = vrot.lane.b32.xlu1 %v2073_v20, %s2375_s9 }
 0x668   :  { %v2075_v28 = vpop.eup %2074 }
 0x669   :  { %v624_v56 = vadd.f32 1.0, %v2075_v28 }
 0x66b   :  { %2076 = vrcp.f32 %v624_v56  ;;  %v639_v13 = vand.u32 2147483648, %v624_v56  ;;  %v637_v22 = vand.u32 2147483647, %v624_v56  ;;  %vm633_vm14 = vweird.f32 %v624_v56 }
 0x66d   :  { %v640_v26 = vor.u32 1.1754944e-38, %v639_v13  ;;  %vm638_vm3 = vcmp.eq.f32.partialorder %v637_v22, 8.507059e+37 }
 0x671   :  { %v2077_v57 = vpop.eup %2076 }
 0x672   :  { %v629_v63 = vmul.f32 %v2077_v57, %v624_v56  ;;  %vm634_vm13 = vweird.f32 %v2077_v57 }
 0x673   :  { %vm635_vm15 = vmor %vm633_vm14, %vm634_vm13 }
 0x674   :  { %v630_v4 = vsub.f32 1.0, %v629_v63 }
 0x676   :  { %v631_v21 = vmul.f32 %v2077_v57, %v630_v4 }
 0x678   :  { %v632_v25 = vadd.f32 %v2077_v57, %v631_v21 }
 0x67a   :  { %v636_v32 = vsel %vm635_vm15, %v2077_v57, %v632_v25 }
 0x67b   :  { %v641_v33 = vsel %vm638_vm3, %v640_v26, %v636_v32 }
 0x67c   :  { %696 = vrot.lane.b32.xlu2 %v641_v33, %s2375_s9 }
 0x67d   :  { %v603_v34 = vpop.f32.mrf.mxu2 }
 0x67e   :  { %v604_v36 = vadd.f32 %v2585_v35, %v603_v34 }
 0x680   :  { %v1970_v38 = vmul.f32 -1.442695, %v604_v36  ;;  %2078 = vtanh.f32 %v604_v36 }
 0x682   :  { %2080 = vpow2.f32 %v1970_v38 }
 0x686   :  { %v2079_v39 = vpop.eup %2078 }
 0x687   :  { %718 = vrot.lane.b32.xlu0 %v2079_v39, %s2375_s9 }
 0x688   :  { %v2081_v40 = vpop.eup %2080 }
 0x689   :  { %v625_v41 = vadd.f32 1.0, %v2081_v40 }
 0x68b   :  { %2082 = vrcp.f32 %v625_v41  ;;  %v654_v30 = vand.u32 2147483648, %v625_v41  ;;  %v652_v45 = vand.u32 2147483647, %v625_v41  ;;  %vm648_vm5 = vweird.f32 %v625_v41 }
 0x68d   :  { %v655_v48 = vor.u32 1.1754944e-38, %v654_v30  ;;  %vm653_vm7 = vcmp.eq.f32.partialorder %v652_v45, 8.507059e+37 }
 0x691   :  { %v2083_v42 = vpop.eup %2082 }
 0x692   :  { %v644_v29 = vmul.f32 %v2083_v42, %v625_v41  ;;  %vm649_vm4 = vweird.f32 %v2083_v42 }
 0x693   :  { %vm650_vm6 = vmor %vm648_vm5, %vm649_vm4 }
 0x694   :  { %v645_v43 = vsub.f32 1.0, %v644_v29 }
 0x696   :  { %v646_v44 = vmul.f32 %v2083_v42, %v645_v43 }
 0x698   :  { %v647_v46 = vadd.f32 %v2083_v42, %v646_v44 }
 0x69a   :  { %v651_v27 = vsel %vm650_vm6, %v2083_v42, %v647_v46 }
 0x69b   :  { %v656_v14 = vsel %vm653_vm7, %v655_v48, %v651_v27 }
 0x69c   :  { %698 = vrot.lane.b32.xlu0 %v656_v14, %s2375_s9 }
 0x6d6   :  { %v697_v51 = vpop.permute.xlu2 %696 }
 0x6d7   :  { %v708_v52 = vmul.f32 %v697_v51, %v2596_v11 }
 0x6d9   :  { %v717_v31 = vpop.permute.xlu1 %716 }
 0x6da   :  { %v728_v49 = vmul.f32 %v717_v31, %v641_v33 }
 0x6dc   :  { %736 = vrot.lane.b32.xlu1 %v728_v49, %s2376_s27 }
 0x6f9   :  { %v719_v50 = vpop.permute.xlu0 %718 }
 0x6fa   :  { %v729_v47 = vmul.f32 %v719_v50, %v656_v14 }
 0x6fc   :  { %738 = vrot.lane.b32.xlu2 %v729_v47, %s2376_s27 }
 0x70e   :  { %v699_v18 = vpop.permute.xlu0 %698 }
 0x70f   :  { %v709_v19 = vmul.f32 %v699_v18, %v2601_v23 }
 0x74e   :  { %v737_v54 = vpop.permute.xlu1 %736 }
 0x74f   :  { %v2861_v17 = vadd.f32 %v737_v54, %v708_v52 }
 0x751   :  { %2084 = vtanh.f32 %v2861_v17 }
 0x756   :  { %v739_v20 = vpop.permute.xlu2 %738 }
 0x757   :  { %v2085_v28 = vpop.eup %2084  ;;  %v2865_v56 = vadd.f32 %v739_v20, %v709_v19 }
 0x758   :  { %760 = vrot.lane.b32.xlu1 %v2085_v28, %s2377_s29 }
 0x759   :  { %2086 = vtanh.f32 %v2865_v56 }
 0x75f   :  { %v2087_v57 = vpop.eup %2086 }
 0x760   :  { %762 = vrot.lane.b32.xlu0 %v2087_v57, %s2377_s29 }
 0x7ca   :  { %v761_v11 = vpop.permute.xlu1 %760 }
 0x7cb   :  { %v772_v63 = vmul.f32 %v761_v11, %v641_v33 }
 0x7cd   :  { %817 = vrot.lane.b32.xlu2 %v772_v63, %s2376_s27 }
 0x7d2   :  { %v763_v4 = vpop.permute.xlu0 %762 }
 0x7d3   :  { %v773_v13 = vmul.f32 %v763_v4, %v656_v14 }
 0x7d5   :  { %819 = vrot.lane.b32.xlu1 %v773_v13, %s2376_s27 }
 0x827   :  { %v818_v23 = vpop.permute.xlu2 %817 }
 0x828   :  { %1973 = vmatmul.msk.f32.vlgmr.msrb.gmra.mxu3 %vm172_vm1, %v818_v23 }
 0x829   :  { %1727 = vmatpush.msrb.mxu3 %v2679_v58 }
 0x82b   :  { %1728 = vmatpush.msrb.mxu3 %v2684_v59 }
 0x82d   :  { %1729 = vmatpush.msrb.mxu3 %v2691_v60  ;;  %v1975_v60 = vld [vmem:[%s3236_s2 + $0x10] sm:$0xff] }
 0x82f   :  { %1730 = vmatpush.msrb.mxu3 %v2699_v61 }
 0x831   :  { %1731 = vmatpush.msrb.mxu3 %v2707_v62 }
 0x833   :  { %1732 = vmatpush.msrb.mxu3 %v2718_v0 }
 0x835   :  { %1733 = vmatpush.msrb.mxu3 %v2726_v1 }
 0x837   :  { %1734 = vmatpush.msrb.mxu3 %v2734_v2  ;;  %v1976_v2 = vld [vmem:[%s3236_s2 + $0x18] sm:$0xff] }
 0x839   :  { %1735 = vmatpush.msrb.mxu3 %v2742_v3 }
 0x83b   :  { %1736 = vmatpush.msrb.mxu3 %v2757_v5 }
 0x83d   :  { %1737 = vmatpush.msrb.mxu3 %v2764_v6 }
 0x83f   :  { %1738 = vmatpush.msrb.mxu3 %v2772_v7 }
 0x841   :  { %1739 = vmatpush.msrb.mxu3 %v2780_v8 }
 0x843   :  { %1740 = vmatpush.msrb.mxu3 %v2788_v9 }
 0x845   :  { %1741 = vmatpush.msrb.mxu3 %v2796_v10 }
 0x847   :  { %v820_v58 = vpop.permute.xlu1 %819  ;;  %1742 = vmatpush.msrb.mxu3 %v2804_v12 }
 0x848   :  { %1974 = vmatmul.msk.f32.gmra.mxu3 %vm172_vm1, %v820_v58 }
 0x8ab   :  { %v842_v59 = vpop.f32.mrf.mxu3 }
 0x8ac   :  { %v843_v61 = vadd.f32 %v2637_v37, %v842_v59 }
 0x8ae   :  { %v851_v62 = vadd.f32 %v1975_v60, %v843_v61 }
 0x8b0   :  { %v853_v0 = vmul.f32 1.1111112, %v851_v62 }
 0x8b2   :  { %855 = vmax.xlane.f32.xlu0 %v853_v0 }
 0x8cb   :  { %v845_v1 = vpop.f32.mrf.mxu3 }
 0x8cc   :  { %v846_v3 = vadd.f32 %v2637_v37, %v845_v1 }
 0x8ce   :  { %v852_v5 = vadd.f32 %v1976_v2, %v846_v3 }
 0x8d0   :  { %v854_v6 = vmul.f32 1.1111112, %v852_v5 }
 0x8d2   :  { %857 = vmax.xlane.f32.xlu2 %v854_v6 }
 0x8ea   :  { %962 = vrot.lane.b32.xlu2 %v772_v63, %s2378_s0 }
 0x925   :  { %v856_v7 = vpop.xlane.xlu0 %855 }
 0x926   :  { %v859_v8 = vsub.f32 %v853_v0, %v856_v7  ;;  %vm873_vm8 = vcmp.eq.f32.partialorder %v853_v0, %v856_v7 }
 0x927   :  { %v1977_v34 = vsel %vm873_vm8, 1.0, %v2379_v24 }
 0x928   :  { %v861_v9 = vmul.f32 1.442695, %v859_v8 }
 0x92a   :  { %2088 = vpow2.f32 %v861_v9 }
 0x930   :  { %v2089_v10 = vpop.eup %2088 }
 0x931   :  { %865 = vadd.xlane.f32.xlu1 %v2089_v10 }
 0x945   :  { %v858_v12 = vpop.xlane.xlu2 %857 }
 0x946   :  { %v860_v21 = vsub.f32 %v854_v6, %v858_v12  ;;  %vm874_vm9 = vcmp.eq.f32.partialorder %v854_v6, %v858_v12 }
 0x947   :  { %v1978_v48 = vsel %vm874_vm9, 1.0, %v2379_v24 }
 0x948   :  { %v863_v22 = vmul.f32 1.442695, %v860_v21 }
 0x94a   :  { %2090 = vpow2.f32 %v863_v22  ;;  %964 = vrot.lane.b32.xlu1 %v773_v13, %s2378_s0 }
 0x94d   :  { %v963_v18 = vpop.permute.xlu2 %962 }
 0x950   :  { %v2091_v25 = vpop.eup %2090 }
 0x951   :  { %867 = vadd.xlane.f32.xlu0 %v2091_v25 }
 0x9a4   :  { %v866_v26 = vpop.xlane.xlu1 %865 }
 0x9a5   :  { %2092 = vrcp.f32 %v866_v26 }
 0x9ab   :  { %v2093_v32 = vpop.eup %2092 }
 0x9ac   :  { %v871_v33 = vmul.f32 %v2093_v32, %v2089_v10 }
 0x9ae   :  { %v879_v36 = vsub.f32 %v1977_v34, %v871_v33 }
 0x9b0   :  { %v881_v38 = vadd.f32 %v879_v36, %v871_v33 }
 0x9b2   :  { %v885_v39 = vrot.slane %v881_v38, 1  ;;  %v886_v40 = vrot.slane %v881_v38, 2  ;;  %v887_v41 = vrot.slane %v881_v38, 3  ;;  %913 = vst [vmem:[#allocation11 + $0x1] sm:$0x1] %v881_v38  ;;  %945 = vmatmul.f32.vlgmr.msra.gmra.mxu0 %v881_v38  ;;  %v888_v42 = vrot.slane %v881_v38, 4 }
 0x9b3   :  { %v889_v29 = vrot.slane %v881_v38, 5  ;;  %v890_v43 = vrot.slane %v881_v38, 6  ;;  %v891_v30 = vrot.slane %v881_v38, 7 }
 0x9b4   :  { %914 = vst [vmem:[#allocation11 + $0x5] sm:$0x1] %v885_v39 }
 0x9b5   :  { %915 = vst [vmem:[#allocation11 + $0x9] sm:$0x1] %v886_v40 }
 0x9b6   :  { %916 = vst [vmem:[#allocation11 + $0xd] sm:$0x1] %v887_v41 }
 0x9b7   :  { %917 = vst [vmem:[#allocation11 + $0x11] sm:$0x1] %v888_v42 }
 0x9b8   :  { %918 = vst [vmem:[#allocation11 + $0x15] sm:$0x1] %v889_v29 }
 0x9b9   :  { %919 = vst [vmem:[#allocation11 + $0x19] sm:$0x1] %v890_v43 }
 0x9ba   :  { %920 = vst [vmem:[#allocation11 + $0x1d] sm:$0x1] %v891_v30 }
 0x9bc   :  { %v965_v28 = vpop.permute.xlu1 %964 }
 0x9c4   :  { %v868_v44 = vpop.xlane.xlu0 %867 }
 0x9c5   :  { %2094 = vrcp.f32 %v868_v44 }
 0x9cb   :  { %v2095_v45 = vpop.eup %2094 }
 0x9cc   :  { %v872_v46 = vmul.f32 %v2095_v45, %v2091_v25 }
 0x9ce   :  { %v880_v27 = vsub.f32 %v1978_v48, %v872_v46 }
 0x9d0   :  { %v882_v14 = vadd.f32 %v880_v27, %v872_v46 }
 0x9d2   :  { %v892_v31 = vrot.slane %v882_v14, 1  ;;  %v893_v49 = vrot.slane %v882_v14, 2  ;;  %v894_v50 = vrot.slane %v882_v14, 3  ;;  %921 = vst [vmem:[#allocation11 + $0x21] sm:$0x1] %v882_v14  ;;  %948 = vmatmul.f32.gmra.mxu0 %v882_v14  ;;  %v895_v47 = vrot.slane %v882_v14, 4 }
 0x9d3   :  { %v896_v51 = vrot.slane %v882_v14, 5  ;;  %v897_v52 = vrot.slane %v882_v14, 6  ;;  %v898_v54 = vrot.slane %v882_v14, 7 }
 0x9d4   :  { %922 = vst [vmem:[#allocation11 + $0x25] sm:$0x1] %v892_v31 }
 0x9d5   :  { %923 = vst [vmem:[#allocation11 + $0x29] sm:$0x1] %v893_v49 }
 0x9d6   :  { %924 = vst [vmem:[#allocation11 + $0x2d] sm:$0x1] %v894_v50  ;;  %v2037_v50 = vld [vmem:[%s3242_s8] ss:$0 sm:$0xff]  ;;  %s2380_s8 = smov 112  }
 0x9d7   :  { %925 = vst [vmem:[#allocation11 + $0x31] sm:$0x1] %v895_v47 }
 0x9d8   :  { %926 = vst [vmem:[#allocation11 + $0x35] sm:$0x1] %v896_v51 }
 0x9d9   :  { %927 = vst [vmem:[#allocation11 + $0x39] sm:$0x1] %v897_v52 }
 0x9da   :  { %928 = vst [vmem:[#allocation11 + $0x3d] sm:$0x1] %v898_v54 }
 0xa2f   :  { %v2902_v19 = vpop.f32.mrf.mxu0 }
 0xa30   :  { %v974_v20 = vsel %vm132_vm0, %v2902_v19, %v963_v18 }
 0xa31   :  { %1979 = vmatmul.msk.f32.vlgmr.msra.gmra.mxu3 %vm290_vm2, %v974_v20 }
 0xa4f   :  { %v2907_v57 = vpop.f32.mrf.mxu0 }
 0xa50   :  { %v975_v11 = vsel %vm132_vm0, %v2907_v57, %v965_v28 }
 0xa51   :  { %1980 = vmatmul.msk.f32.gmra.mxu3 %vm290_vm2, %v975_v11 }
 0xab4   :  { %v1007_v63 = vpop.f32.mrf.mxu3 }
 0xab5   :  { %v1008_v4 = vadd.f32 %v2585_v35, %v1007_v63 }
 0xab7   :  { %v1983_v13 = vmul.f32 -1.442695, %v1008_v4  ;;  %2096 = vtanh.f32 %v1008_v4 }
 0xab9   :  { %2098 = vpow2.f32 %v1983_v13 }
 0xabd   :  { %v2097_v23 = vpop.eup %2096 }
 0xabe   :  { %1123 = vrot.lane.b32.xlu0 %v2097_v23, %s2375_s9 }
 0xabf   :  { %v2099_v58 = vpop.eup %2098 }
 0xac0   :  { %v1031_v59 = vadd.f32 1.0, %v2099_v58 }
 0xac2   :  { %2100 = vrcp.f32 %v1031_v59  ;;  %v1046_v0 = vand.u32 2147483648, %v1031_v59  ;;  %v1044_v2 = vand.u32 2147483647, %v1031_v59  ;;  %vm1040_vm11 = vweird.f32 %v1031_v59 }
 0xac4   :  { %v1047_v5 = vor.u32 1.1754944e-38, %v1046_v0  ;;  %vm1045_vm13 = vcmp.eq.f32.partialorder %v1044_v2, 8.507059e+37  ;;  %v1989_v0 = vld [vmem:[%s3236_s2 + $0x20] sm:$0xff] }
 0xac8   :  { %v2101_v60 = vpop.eup %2100 }
 0xac9   :  { %v1036_v61 = vmul.f32 %v2101_v60, %v1031_v59  ;;  %vm1041_vm10 = vweird.f32 %v2101_v60 }
 0xaca   :  { %vm1042_vm12 = vmor %vm1040_vm11, %vm1041_vm10 }
 0xacb   :  { %v1037_v62 = vsub.f32 1.0, %v1036_v61 }
 0xacd   :  { %v1038_v1 = vmul.f32 %v2101_v60, %v1037_v62 }
 0xacf   :  { %v1039_v3 = vadd.f32 %v2101_v60, %v1038_v1 }
 0xad1   :  { %v1043_v6 = vsel %vm1042_vm12, %v2101_v60, %v1039_v3  ;;  %v2966_v60 = vld [vmem:[%s3244_s10] ss:$0 sm:$0xff] }
 0xad2   :  { %v1048_v7 = vsel %vm1045_vm13, %v1047_v5, %v1043_v6 }
 0xad3   :  { %1103 = vrot.lane.b32.xlu0 %v1048_v7, %s2375_s9 }
 0xad4   :  { %v1010_v8 = vpop.f32.mrf.mxu3 }
 0xad5   :  { %v1011_v9 = vadd.f32 %v2585_v35, %v1010_v8 }
 0xad7   :  { %v1984_v10 = vmul.f32 -1.442695, %v1011_v9  ;;  %2102 = vtanh.f32 %v1011_v9 }
 0xad9   :  { %2104 = vpow2.f32 %v1984_v10 }
 0xadd   :  { %v2103_v12 = vpop.eup %2102 }
 0xade   :  { %1125 = vrot.lane.b32.xlu2 %v2103_v12, %s2375_s9 }
 0xadf   :  { %v2105_v21 = vpop.eup %2104 }
 0xae0   :  { %v1032_v22 = vadd.f32 1.0, %v2105_v21 }
 0xae2   :  { %2106 = vrcp.f32 %v1032_v22  ;;  %v1061_v33 = vand.u32 2147483648, %v1032_v22  ;;  %v1059_v36 = vand.u32 2147483647, %v1032_v22  ;;  %vm1055_vm15 = vweird.f32 %v1032_v22 }
 0xae4   :  { %v1062_v35 = vor.u32 1.1754944e-38, %v1061_v33  ;;  %vm1060_vm4 = vcmp.eq.f32.partialorder %v1059_v36, 8.507059e+37 }
 0xae8   :  { %v2107_v25 = vpop.eup %2106 }
 0xae9   :  { %v1051_v26 = vmul.f32 %v2107_v25, %v1032_v22  ;;  %vm1056_vm14 = vweird.f32 %v2107_v25 }
 0xaea   :  { %vm1057_vm3 = vmor %vm1055_vm15, %vm1056_vm14 }
 0xaeb   :  { %v1052_v32 = vsub.f32 1.0, %v1051_v26 }
 0xaed   :  { %v1053_v34 = vmul.f32 %v2107_v25, %v1052_v32 }
 0xaef   :  { %v1054_v38 = vadd.f32 %v2107_v25, %v1053_v34 }
 0xaf1   :  { %v1058_v39 = vsel %vm1057_vm3, %v2107_v25, %v1054_v38 }
 0xaf2   :  { %v1063_v40 = vsel %vm1060_vm4, %v1062_v35, %v1058_v39 }
 0xaf3   :  { %1105 = vrot.lane.b32.xlu2 %v1063_v40, %s2375_s9 }
 0xb30   :  { %v1124_v41 = vpop.permute.xlu0 %1123 }
 0xb31   :  { %v1135_v42 = vmul.f32 %v1124_v41, %v1048_v7 }
 0xb33   :  { %1143 = vrot.lane.b32.xlu1 %v1135_v42, %s2376_s27 }
 0xb38   :  { %v1126_v29 = vpop.permute.xlu2 %1125 }
 0xb39   :  { %v1136_v43 = vmul.f32 %v1126_v29, %v1063_v40 }
 0xb3b   :  { %1145 = vrot.lane.b32.xlu0 %v1136_v43, %s2376_s27 }
 0xb45   :  { %v1104_v30 = vpop.permute.xlu0 %1103 }
 0xb46   :  { %v1115_v44 = vmul.f32 %v1104_v30, %v2861_v17  ;;  %v238_v17 = vadd.f32 %v2037_v50, %v2848_v55  ;;  %v241_v55 = vadd.f32 %v2037_v50, %v2850_v16 }
 0xb4d   :  { %v1106_v48 = vpop.permute.xlu2 %1105 }
 0xb4e   :  { %v1116_v27 = vmul.f32 %v1106_v48, %v2865_v56 }
 0xba5   :  { %v1144_v45 = vpop.permute.xlu1 %1143 }
 0xba6   :  { %v2921_v46 = vadd.f32 %v1144_v45, %v1115_v44 }
 0xba8   :  { %2108 = vtanh.f32 %v2921_v46 }
 0xbad   :  { %v1146_v14 = vpop.permute.xlu0 %1145 }
 0xbae   :  { %v2109_v31 = vpop.eup %2108  ;;  %v2925_v49 = vadd.f32 %v1146_v14, %v1116_v27 }
 0xbaf   :  { %1167 = vrot.lane.b32.xlu1 %v2109_v31, %s2377_s29 }
 0xbb0   :  { %2110 = vtanh.f32 %v2925_v49 }
 0xbb1   :  { %2112 = vtanh.f32 %v238_v17 }
 0xbb2   :  { %2114 = vtanh.f32 %v241_v55 }
 0xbb6   :  { %v2111_v47 = vpop.eup %2110 }
 0xbb7   :  { %1169 = vrot.lane.b32.xlu2 %v2111_v47, %s2377_s29  ;;  %v2934_v51 = vpop.eup %2112 }
 0xbb8   :  { %v2950_v28 = vpop.eup %2114 }
 0xbbf   :  { %551 = vrot.lane.b32.xlu2 %v2934_v51, %s2375_s9 }
 0xc11   :  { %v1170_v56 = vpop.permute.xlu2 %1169 }
 0xc12   :  { %v2938_v52 = vmul.f32 %v1170_v56, %v1063_v40 }
 0xc14   :  { %1218 = vrot.lane.b32.xlu1 %v2938_v52, %s2376_s27 }
 0xc19   :  { %v552_v54 = vpop.permute.xlu2 %551 }
 0xc1a   :  { %559 = vrot.lane.b32.xlu2 %v552_v54, %s2378_s0 }
 0xc1c   :  { %543 = vrot.lane.b32.xlu1 %v2832_v15, %s2380_s8 }
 0xc21   :  { %v1168_v18 = vpop.permute.xlu1 %1167 }
 0xc22   :  { %v2946_v20 = vmul.f32 %v1168_v18, %v1048_v7  ;;  %v1990_v7 = vld [vmem:[%s3236_s2 + $0x28] sm:$0xff] }
 0xc24   :  { %1216 = vrot.lane.b32.xlu0 %v2946_v20, %s2376_s27 }
 0xc2c   :  { %553 = vrot.lane.b32.xlu0 %v2950_v28, %s2375_s9 }
 0xc34   :  { %545 = vrot.lane.b32.xlu0 %v2843_v53, %s2380_s8 }
 0xc74   :  { %v560_v63 = vpop.permute.xlu2 %559 }
 0xc86   :  { %v1219_v11 = vpop.permute.xlu1 %1218 }
 0xc8e   :  { %v544_v15 = vpop.permute.xlu1 %543 }
 0xc8f   :  { %v569_v16 = vsel %vm132_vm0, %v544_v15, %v560_v63 }
 0xc90   :  { %1967 = vmatmul.msk.f32.gmra.mxu2 %vm290_vm2, %v569_v16 }
 0xc96   :  { %v1217_v4 = vpop.permute.xlu0 %1216 }
 0xc97   :  { %1987 = vmatmul.msk.f32.vlgmr.msrb.gmra.mxu1 %vm172_vm1, %v1217_v4 }
 0xc9e   :  { %v554_v13 = vpop.permute.xlu0 %553 }
 0xc9f   :  { %1988 = vmatmul.msk.f32.gmra.mxu1 %vm172_vm1, %v1219_v11  ;;  %561 = vrot.lane.b32.xlu1 %v554_v13, %s2378_s0 }
 0xca6   :  { %v546_v23 = vpop.permute.xlu0 %545 }
 0xd11   :  { %v562_v58 = vpop.permute.xlu1 %561 }
 0xd12   :  { %v570_v59 = vsel %vm132_vm0, %v546_v23, %v562_v58 }
 0xd13   :  { %v606_v53 = vpop.f32.mrf.mxu2  ;;  %1968 = vmatmul.msk.f32.gmra.mxu2 %vm290_vm2, %v570_v59 }
 0xd14   :  { %v607_v61 = vadd.f32 %v2966_v60, %v606_v53  ;;  %v1241_v62 = vpop.f32.mrf.mxu1 }
 0xd15   :  { %v1242_v1 = vadd.f32 %v2637_v37, %v1241_v62 }
 0xd16   :  { %v1971_v2 = vmul.f32 -1.442695, %v607_v61 }
 0xd17   :  { %v1250_v3 = vadd.f32 %v1989_v0, %v1242_v1 }
 0xd18   :  { %2116 = vpow2.f32 %v1971_v2 }
 0xd19   :  { %v2973_v5 = vmul.f32 1.1111112, %v1250_v3 }
 0xd1b   :  { %1254 = vmax.xlane.f32.xlu2 %v2973_v5 }
 0xd1c   :  { %v1244_v6 = vpop.f32.mrf.mxu1 }
 0xd1d   :  { %v1245_v8 = vadd.f32 %v2637_v37, %v1244_v6 }
 0xd1e   :  { %v2117_v9 = vpop.eup %2116 }
 0xd1f   :  { %v626_v10 = vadd.f32 1.0, %v2117_v9  ;;  %v1251_v12 = vadd.f32 %v1990_v7, %v1245_v8 }
 0xd21   :  { %v2980_v21 = vmul.f32 1.1111112, %v1251_v12  ;;  %2118 = vrcp.f32 %v626_v10  ;;  %v669_v36 = vand.u32 2147483648, %v626_v10  ;;  %vm663_vm6 = vweird.f32 %v626_v10 }
 0xd22   :  { %2120 = vtanh.f32 %v607_v61  ;;  %v667_v37 = vand.u32 2147483647, %v626_v10 }
 0xd23   :  { %1256 = vmax.xlane.f32.xlu0 %v2980_v21  ;;  %v670_v35 = vor.u32 1.1754944e-38, %v669_v36 }
 0xd24   :  { %vm668_vm8 = vcmp.eq.f32.partialorder %v667_v37, 8.507059e+37 }
 0xd27   :  { %v2119_v22 = vpop.eup %2118 }
 0xd28   :  { %v659_v25 = vmul.f32 %v2119_v22, %v626_v10  ;;  %v2121_v33 = vpop.eup %2120  ;;  %vm664_vm5 = vweird.f32 %v2119_v22 }
 0xd29   :  { %vm665_vm7 = vmor %vm663_vm6, %vm664_vm5 }
 0xd2a   :  { %v660_v26 = vsub.f32 1.0, %v659_v25 }
 0xd2c   :  { %v661_v32 = vmul.f32 %v2119_v22, %v660_v26 }
 0xd2e   :  { %v662_v34 = vadd.f32 %v2119_v22, %v661_v32 }
 0xd30   :  { %v666_v38 = vsel %vm665_vm7, %v2119_v22, %v662_v34 }
 0xd31   :  { %v2984_v39 = vsel %vm668_vm8, %v670_v35, %v666_v38 }
 0xd37   :  { %720 = vrot.lane.b32.xlu0 %v2121_v33, %s2375_s9 }
 0xd3f   :  { %700 = vrot.lane.b32.xlu0 %v2984_v39, %s2375_s9 }
 0xd47   :  { %1363 = vrot.lane.b32.xlu0 %v2938_v52, %s2378_s0 }
 0xd8e   :  { %v1255_v40 = vpop.xlane.xlu2 %1254 }
 0xd8f   :  { %v1258_v41 = vsub.f32 %v2973_v5, %v1255_v40  ;;  %vm1272_vm13 = vcmp.eq.f32.partialorder %v2973_v5, %v1255_v40 }
 0xd90   :  { %v1991_v59 = vsel %vm1272_vm13, 1.0, %v2379_v24 }
 0xd91   :  { %v1260_v42 = vmul.f32 1.442695, %v1258_v41 }
 0xd93   :  { %2122 = vpow2.f32 %v1260_v42 }
 0xd96   :  { %v609_v29 = vpop.f32.mrf.mxu2  ;;  %v1257_v43 = vpop.xlane.xlu0 %1256 }
 0xd97   :  { %v610_v30 = vadd.f32 %v2966_v60, %v609_v29  ;;  %v1259_v44 = vsub.f32 %v2980_v21, %v1257_v43  ;;  %vm1273_vm14 = vcmp.eq.f32.partialorder %v2980_v21, %v1257_v43 }
 0xd98   :  { %v1992_v9 = vsel %vm1273_vm14, 1.0, %v2379_v24 }
 0xd99   :  { %v2123_v45 = vpop.eup %2122  ;;  %v1972_v48 = vmul.f32 -1.442695, %v610_v30  ;;  %v1262_v27 = vmul.f32 1.442695, %v1259_v44 }
 0xd9a   :  { %1264 = vadd.xlane.f32.xlu1 %v2123_v45 }
 0xd9b   :  { %2124 = vpow2.f32 %v1972_v48 }
 0xd9c   :  { %2126 = vpow2.f32 %v1262_v27 }
 0xda1   :  { %v2125_v14 = vpop.eup %2124 }
 0xda2   :  { %v2127_v31 = vpop.eup %2126  ;;  %v627_v50 = vadd.f32 1.0, %v2125_v14 }
 0xda3   :  { %1266 = vadd.xlane.f32.xlu2 %v2127_v31 }
 0xda4   :  { %2128 = vrcp.f32 %v627_v50  ;;  %v684_v63 = vand.u32 2147483648, %v627_v50  ;;  %vm678_vm10 = vweird.f32 %v627_v50  ;;  %v682_v15 = vand.u32 2147483647, %v627_v50 }
 0xda5   :  { %2130 = vtanh.f32 %v610_v30 }
 0xda6   :  { %v685_v4 = vor.u32 1.1754944e-38, %v684_v63  ;;  %vm683_vm12 = vcmp.eq.f32.partialorder %v682_v15, 8.507059e+37 }
 0xda9   :  { %v721_v54 = vpop.permute.xlu0 %720 }
 0xdaa   :  { %v2129_v17 = vpop.eup %2128  ;;  %v730_v18 = vmul.f32 %v721_v54, %v2984_v39 }
 0xdab   :  { %v674_v47 = vmul.f32 %v2129_v17, %v627_v50  ;;  %v2131_v56 = vpop.eup %2130  ;;  %vm679_vm9 = vweird.f32 %v2129_v17 }
 0xdac   :  { %vm680_vm11 = vmor %vm678_vm10, %vm679_vm9 }
 0xdad   :  { %v675_v52 = vsub.f32 1.0, %v674_v47 }
 0xdaf   :  { %v676_v55 = vmul.f32 %v2129_v17, %v675_v52 }
 0xdb1   :  { %v677_v11 = vadd.f32 %v2129_v17, %v676_v55  ;;  %v701_v35 = vpop.permute.xlu0 %700 }
 0xdb2   :  { %v710_v40 = vmul.f32 %v2934_v51, %v701_v35 }
 0xdb3   :  { %722 = vrot.lane.b32.xlu1 %v2131_v56, %s2375_s9  ;;  %v681_v16 = vsel %vm680_vm11, %v2129_v17, %v677_v11 }
 0xdb4   :  { %v2998_v13 = vsel %vm683_vm12, %v685_v4, %v681_v16 }
 0xdbb   :  { %1361 = vrot.lane.b32.xlu2 %v2946_v20, %s2378_s0  ;;  %740 = vrot.lane.b32.xlu1 %v730_v18, %s2376_s27 }
 0xdc3   :  { %702 = vrot.lane.b32.xlu2 %v2998_v13, %s2375_s9 }
 0xe0d   :  { %v1265_v23 = vpop.xlane.xlu1 %1264 }
 0xe0e   :  { %2132 = vrcp.f32 %v1265_v23 }
 0xe14   :  { %v2133_v20 = vpop.eup %2132 }
 0xe15   :  { %v1270_v58 = vmul.f32 %v2133_v20, %v2123_v45 }
 0xe16   :  { %v1267_v53 = vpop.xlane.xlu2 %1266 }
 0xe17   :  { %v1278_v61 = vsub.f32 %v1991_v59, %v1270_v58  ;;  %2134 = vrcp.f32 %v1267_v53 }
 0xe19   :  { %v1280_v62 = vadd.f32 %v1278_v61, %v1270_v58 }
 0xe1b   :  { %v1284_v0 = vrot.slane %v1280_v62, 1  ;;  %v1285_v1 = vrot.slane %v1280_v62, 2  ;;  %v1286_v2 = vrot.slane %v1280_v62, 3  ;;  %1312 = vst [vmem:[#allocation11 + $0x2] sm:$0x1] %v1280_v62  ;;  %1344 = vmatmul.f32.vlgmr.msra.gmra.mxu2 %v1280_v62  ;;  %v1287_v3 = vrot.slane %v1280_v62, 4 }
 0xe1c   :  { %v1288_v7 = vrot.slane %v1280_v62, 5  ;;  %v1289_v5 = vrot.slane %v1280_v62, 6  ;;  %v1290_v10 = vrot.slane %v1280_v62, 7 }
 0xe1d   :  { %v2135_v6 = vpop.eup %2134  ;;  %1313 = vst [vmem:[#allocation11 + $0x6] sm:$0x1] %v1284_v0 }
 0xe1e   :  { %1314 = vst [vmem:[#allocation11 + $0xa] sm:$0x1] %v1285_v1  ;;  %v1271_v8 = vmul.f32 %v2135_v6, %v2127_v31  ;;  %v1362_v43 = vpop.permute.xlu2 %1361 }
 0xe1f   :  { %1315 = vst [vmem:[#allocation11 + $0xe] sm:$0x1] %v1286_v2 }
 0xe20   :  { %1316 = vst [vmem:[#allocation11 + $0x12] sm:$0x1] %v1287_v3  ;;  %v1279_v12 = vsub.f32 %v1992_v9, %v1271_v8 }
 0xe21   :  { %1317 = vst [vmem:[#allocation11 + $0x16] sm:$0x1] %v1288_v7 }
 0xe22   :  { %1318 = vst [vmem:[#allocation11 + $0x1a] sm:$0x1] %v1289_v5  ;;  %v1281_v22 = vadd.f32 %v1279_v12, %v1271_v8 }
 0xe23   :  { %1319 = vst [vmem:[#allocation11 + $0x1e] sm:$0x1] %v1290_v10 }
 0xe24   :  { %v1291_v25 = vrot.slane %v1281_v22, 1  ;;  %v1292_v26 = vrot.slane %v1281_v22, 2  ;;  %v1293_v21 = vrot.slane %v1281_v22, 3  ;;  %1320 = vst [vmem:[#allocation11 + $0x22] sm:$0x1] %v1281_v22  ;;  %1347 = vmatmul.f32.gmra.mxu2 %v1281_v22  ;;  %v1294_v32 = vrot.slane %v1281_v22, 4 }
 0xe25   :  { %v723_v33 = vpop.permute.xlu1 %722  ;;  %v1295_v34 = vrot.slane %v1281_v22, 5  ;;  %v1296_v37 = vrot.slane %v1281_v22, 6  ;;  %v1297_v38 = vrot.slane %v1281_v22, 7 }
 0xe26   :  { %1321 = vst [vmem:[#allocation11 + $0x26] sm:$0x1] %v1291_v25  ;;  %v731_v36 = vmul.f32 %v723_v33, %v2998_v13  ;;  %v703_v30 = vpop.permute.xlu2 %702 }
 0xe27   :  { %1322 = vst [vmem:[#allocation11 + $0x2a] sm:$0x1] %v1292_v26  ;;  %v711_v44 = vmul.f32 %v2950_v28, %v703_v30 }
 0xe28   :  { %1323 = vst [vmem:[#allocation11 + $0x2e] sm:$0x1] %v1293_v21  ;;  %742 = vrot.lane.b32.xlu1 %v731_v36, %s2376_s27 }
 0xe29   :  { %1324 = vst [vmem:[#allocation11 + $0x32] sm:$0x1] %v1294_v32 }
 0xe2a   :  { %1325 = vst [vmem:[#allocation11 + $0x36] sm:$0x1] %v1295_v34 }
 0xe2b   :  { %1326 = vst [vmem:[#allocation11 + $0x3a] sm:$0x1] %v1296_v37 }
 0xe2c   :  { %1327 = vst [vmem:[#allocation11 + $0x3e] sm:$0x1] %v1297_v38 }
 0xe2d   :  { %v741_v41 = vpop.permute.xlu1 %740 }
 0xe2e   :  { %v3009_v42 = vadd.f32 %v741_v41, %v710_v40 }
 0xe30   :  { %2136 = vtanh.f32 %v3009_v42  ;;  %954 = vrot.lane.b32.xlu1 %v2902_v19, %s2380_s8  ;;  %v1364_v19 = vpop.permute.xlu0 %1363 }
 0xe36   :  { %v2137_v29 = vpop.eup %2136 }
 0xe37   :  { %764 = vrot.lane.b32.xlu0 %v2137_v29, %s2377_s29 }
 0xe9a   :  { %v743_v45 = vpop.permute.xlu1 %742 }
 0xe9b   :  { %v3016_v48 = vadd.f32 %v743_v45, %v711_v44 }
 0xe9d   :  { %2138 = vtanh.f32 %v3016_v48 }
 0xe9e   :  { %v3019_v51 = vpop.f32.mrf.mxu2 }
 0xe9f   :  { %v1373_v27 = vsel %vm132_vm0, %v3019_v51, %v1362_v43 }
 0xea0   :  { %1993 = vmatmul.msk.f32.vlgmr.msrb.gmra.mxu0 %vm290_vm2, %v1373_v27 }
 0xea2   :  { %v955_v54 = vpop.permute.xlu1 %954 }
 0xea3   :  { %v2139_v14 = vpop.eup %2138 }
 0xea4   :  { %766 = vrot.lane.b32.xlu2 %v2139_v14, %s2377_s29 }
 0xea7   :  { %v3025_v31 = vpop.f32.mrf.mxu2 }
 0xea8   :  { %v1374_v28 = vsel %vm132_vm0, %v3025_v31, %v1364_v19 }
 0xea9   :  { %1994 = vmatmul.msk.f32.gmra.mxu0 %vm290_vm2, %v1374_v28  ;;  %v765_v50 = vpop.permute.xlu0 %764 }
 0xeaa   :  { %v3031_v17 = vmul.f32 %v765_v50, %v2984_v39 }
 0xeac   :  { %956 = vrot.lane.b32.xlu2 %v2907_v57, %s2380_s8  ;;  %966 = vrot.lane.b32.xlu0 %v3031_v17, %s2378_s0 }
 0xefe   :  { %v767_v47 = vpop.permute.xlu2 %766 }
 0xeff   :  { %v3038_v56 = vmul.f32 %v767_v47, %v2998_v13 }
 0xf01   :  { %968 = vrot.lane.b32.xlu1 %v3038_v56, %s2378_s0 }
 0xf06   :  { %v957_v33 = vpop.permute.xlu2 %956 }
 0xf1d   :  { %v1406_v52 = vpop.f32.mrf.mxu0 }
 0xf1e   :  { %v1407_v55 = vadd.f32 %v2966_v60, %v1406_v52  ;;  %v967_v18 = vpop.permute.xlu0 %966 }
 0xf1f   :  { %v976_v39 = vsel %vm132_vm0, %v955_v54, %v967_v18 }
 0xf20   :  { %v1997_v11 = vmul.f32 -1.442695, %v1407_v55  ;;  %2140 = vtanh.f32 %v1407_v55  ;;  %1981 = vmatmul.msk.f32.gmra.mxu3 %vm290_vm2, %v976_v39 }
 0xf22   :  { %2142 = vpow2.f32 %v1997_v11 }
 0xf26   :  { %v2141_v57 = vpop.eup %2140  ;;  %v1409_v63 = vpop.f32.mrf.mxu0 }
 0xf27   :  { %v1410_v15 = vadd.f32 %v2966_v60, %v1409_v63  ;;  %1522 = vrot.lane.b32.xlu0 %v2141_v57, %s2375_s9 }
 0xf28   :  { %v2143_v16 = vpop.eup %2142 }
 0xf29   :  { %v1430_v4 = vadd.f32 1.0, %v2143_v16  ;;  %v1998_v13 = vmul.f32 -1.442695, %v1410_v15  ;;  %2144 = vtanh.f32 %v1410_v15 }
 0xf2b   :  { %2146 = vrcp.f32 %v1430_v4  ;;  %v1445_v62 = vand.u32 2147483648, %v1430_v4  ;;  %v1443_v1 = vand.u32 2147483647, %v1430_v4  ;;  %vm1439_vm3 = vweird.f32 %v1430_v4 }
 0xf2c   :  { %2148 = vpow2.f32 %v1998_v13 }
 0xf2d   :  { %v1446_v3 = vor.u32 1.1754944e-38, %v1445_v62  ;;  %vm1444_vm5 = vcmp.eq.f32.partialorder %v1443_v1, 8.507059e+37 }
 0xf2f   :  { %v2145_v23 = vpop.eup %2144 }
 0xf30   :  { %1524 = vrot.lane.b32.xlu2 %v2145_v23, %s2375_s9 }
 0xf31   :  { %v2147_v20 = vpop.eup %2146 }
 0xf32   :  { %v2149_v58 = vpop.eup %2148  ;;  %v1435_v59 = vmul.f32 %v2147_v20, %v1430_v4  ;;  %vm1440_vm15 = vweird.f32 %v2147_v20 }
 0xf33   :  { %v1431_v53 = vadd.f32 1.0, %v2149_v58  ;;  %vm1441_vm4 = vmor %vm1439_vm3, %vm1440_vm15 }
 0xf34   :  { %v1436_v61 = vsub.f32 1.0, %v1435_v59 }
 0xf35   :  { %2150 = vrcp.f32 %v1431_v53  ;;  %v1460_v10 = vand.u32 2147483648, %v1431_v53  ;;  %v1458_v22 = vand.u32 2147483647, %v1431_v53  ;;  %vm1454_vm7 = vweird.f32 %v1431_v53 }
 0xf36   :  { %v1437_v0 = vmul.f32 %v2147_v20, %v1436_v61 }
 0xf37   :  { %v1461_v26 = vor.u32 1.1754944e-38, %v1460_v10  ;;  %vm1459_vm9 = vcmp.eq.f32.partialorder %v1458_v22, 8.507059e+37 }
 0xf38   :  { %v1438_v2 = vadd.f32 %v2147_v20, %v1437_v0 }
 0xf3a   :  { %v1442_v6 = vsel %vm1441_vm4, %v2147_v20, %v1438_v2 }
 0xf3b   :  { %v2151_v7 = vpop.eup %2150  ;;  %v3048_v5 = vsel %vm1444_vm5, %v1446_v3, %v1442_v6 }
 0xf3c   :  { %1502 = vrot.lane.b32.xlu1 %v3048_v5, %s2375_s9  ;;  %v1450_v8 = vmul.f32 %v2151_v7, %v1431_v53  ;;  %vm1455_vm6 = vweird.f32 %v2151_v7 }
 0xf3d   :  { %vm1456_vm8 = vmor %vm1454_vm7, %vm1455_vm6 }
 0xf3e   :  { %v1451_v9 = vsub.f32 1.0, %v1450_v8 }
 0xf40   :  { %v1452_v12 = vmul.f32 %v2151_v7, %v1451_v9 }
 0xf42   :  { %v1453_v25 = vadd.f32 %v2151_v7, %v1452_v12 }
 0xf44   :  { %v1457_v21 = vsel %vm1456_vm8, %v2151_v7, %v1453_v25 }
 0xf45   :  { %v3052_v32 = vsel %vm1459_vm9, %v1461_v26, %v1457_v21 }
 0xf46   :  { %1504 = vrot.lane.b32.xlu2 %v3052_v32, %s2375_s9 }
 0xf73   :  { %v969_v34 = vpop.permute.xlu1 %968 }
 0xf74   :  { %v977_v36 = vsel %vm132_vm0, %v957_v33, %v969_v34 }
 0xf75   :  { %1982 = vmatmul.msk.f32.gmra.mxu3 %vm290_vm2, %v977_v36 }
 0xf8a   :  { %v1525_v37 = vpop.permute.xlu2 %1524 }
 0xf8b   :  { %v1535_v38 = vmul.f32 %v1525_v37, %v3052_v32 }
 0xf8d   :  { %1544 = vrot.lane.b32.xlu1 %v1535_v38, %s2376_s27 }
 0xf99   :  { %v1523_v35 = vpop.permute.xlu0 %1522 }
 0xf9a   :  { %v1534_v40 = vmul.f32 %v1523_v35, %v3048_v5 }
 0xf9c   :  { %1542 = vrot.lane.b32.xlu0 %v1534_v40, %s2376_s27 }
 0xfa0   :  { %v1505_v45 = vpop.permute.xlu2 %1504 }
 0xfa1   :  { %v1515_v27 = vmul.f32 %v1505_v45, %v2925_v49 }
 0xfa3   :  { %v1013_v41 = vpop.f32.mrf.mxu3 }
 0xfa4   :  { %v1014_v29 = vadd.f32 %v2966_v60, %v1013_v41 }
 0xfa6   :  { %2152 = vtanh.f32 %v1014_v29  ;;  %v1985_v44 = vmul.f32 -1.442695, %v1014_v29 }
 0xfa8   :  { %2154 = vpow2.f32 %v1985_v44 }
 0xfac   :  { %v2153_v43 = vpop.eup %2152 }
 0xfad   :  { %1127 = vrot.lane.b32.xlu1 %v2153_v43, %s2375_s9 }
 0xfae   :  { %v1503_v30 = vpop.permute.xlu1 %1502  ;;  %v2155_v28 = vpop.eup %2154 }
 0xfaf   :  { %v1033_v50 = vadd.f32 1.0, %v2155_v28  ;;  %v1514_v52 = vmul.f32 %v1503_v30, %v2921_v46 }
 0xfb1   :  { %v1076_v46 = vand.u32 2147483648, %v1033_v50  ;;  %vm1070_vm11 = vweird.f32 %v1033_v50  ;;  %v1074_v13 = vand.u32 2147483647, %v1033_v50 }
 0xfb3   :  { %v1077_v20 = vor.u32 1.1754944e-38, %v1076_v46  ;;  %vm1075_vm13 = vcmp.eq.f32.partialorder %v1074_v13, 8.507059e+37 }
 0xff8   :  { %v1016_v39 = vpop.f32.mrf.mxu3 }
 0xff9   :  { %v1017_v49 = vadd.f32 %v2966_v60, %v1016_v39 }
 0xffb   :  { %v1986_v59 = vmul.f32 -1.442695, %v1017_v49 }
 0xfff   :  { %v1545_v19 = vpop.permute.xlu1 %1544 }
0x1000   :  { %v1555_v14 = vadd.f32 %v1545_v19, %v1515_v27 }
0x1002   :  { %2156 = vtanh.f32 %v1555_v14  ;;  %v2213_v14 = vld [vmem:[%s3246_s12] ss:$0 sm:$0xff] }
0x1003   :  { %2158 = vrcp.f32 %v1033_v50 }
0x1008   :  { %v2157_v47 = vpop.eup %2156 }
0x1009   :  { %1568 = vrot.lane.b32.xlu2 %v2157_v47, %s2377_s29  ;;  %v2159_v18 = vpop.eup %2158 }
0x100a   :  { %v1066_v11 = vmul.f32 %v2159_v18, %v1033_v50  ;;  %vm1071_vm10 = vweird.f32 %v2159_v18 }
0x100b   :  { %vm1072_vm12 = vmor %vm1070_vm11, %vm1071_vm10 }
0x100c   :  { %v1067_v63 = vsub.f32 1.0, %v1066_v11 }
0x100e   :  { %v1543_v54 = vpop.permute.xlu0 %1542  ;;  %v1068_v15 = vmul.f32 %v2159_v18, %v1067_v63 }
0x100f   :  { %v1554_v55 = vadd.f32 %v1543_v54, %v1514_v52  ;;  %v2003_v52 = vld [vmem:[%s3236_s2 + $0x30] sm:$0xff] }
0x1010   :  { %v1069_v4 = vadd.f32 %v2159_v18, %v1068_v15 }
0x1011   :  { %2160 = vtanh.f32 %v1554_v55 }
0x1012   :  { %2162 = vtanh.f32 %v1017_v49  ;;  %v1073_v23 = vsel %vm1072_vm12, %v2159_v18, %v1069_v4 }
0x1013   :  { %v1078_v58 = vsel %vm1075_vm13, %v1077_v20, %v1073_v23  ;;  %2164 = vpow2.f32 %v1986_v59 }
0x1017   :  { %v2161_v57 = vpop.eup %2160 }
0x1018   :  { %1566 = vrot.lane.b32.xlu0 %v2161_v57, %s2377_s29  ;;  %v2163_v16 = vpop.eup %2162 }
0x1019   :  { %v2165_v53 = vpop.eup %2164 }
0x101a   :  { %v1034_v61 = vadd.f32 1.0, %v2165_v53 }
0x101c   :  { %2166 = vrcp.f32 %v1034_v61  ;;  %v1091_v8 = vand.u32 2147483648, %v1034_v61  ;;  %vm1085_vm15 = vweird.f32 %v1034_v61  ;;  %v1089_v9 = vand.u32 2147483647, %v1034_v61 }
0x101e   :  { %v1092_v12 = vor.u32 1.1754944e-38, %v1091_v8  ;;  %vm1090_vm4 = vcmp.eq.f32.partialorder %v1089_v9, 8.507059e+37 }
0x101f   :  { %v1128_v21 = vpop.permute.xlu1 %1127 }
0x1020   :  { %1129 = vrot.lane.b32.xlu0 %v2163_v16, %s2375_s9  ;;  %v1137_v33 = vmul.f32 %v1128_v21, %v1078_v58 }
0x1022   :  { %v2167_v62 = vpop.eup %2166 }
0x1023   :  { %v1081_v0 = vmul.f32 %v2167_v62, %v1034_v61  ;;  %vm1086_vm14 = vweird.f32 %v2167_v62 }
0x1024   :  { %vm1087_vm3 = vmor %vm1085_vm15, %vm1086_vm14 }
0x1025   :  { %v1082_v1 = vsub.f32 1.0, %v1081_v0 }
0x1027   :  { %v1083_v2 = vmul.f32 %v2167_v62, %v1082_v1 }
0x1028   :  { %1107 = vrot.lane.b32.xlu0 %v1078_v58, %s2375_s9 }
0x1029   :  { %v1084_v7 = vadd.f32 %v2167_v62, %v1083_v2 }
0x102b   :  { %v1088_v10 = vsel %vm1087_vm3, %v2167_v62, %v1084_v7 }
0x102c   :  { %v1093_v22 = vsel %vm1090_vm4, %v1092_v12, %v1088_v10 }
0x1063   :  { %v1569_v3 = vpop.permute.xlu2 %1568 }
0x1064   :  { %v1579_v6 = vmul.f32 %v1569_v3, %v3052_v32 }
0x1066   :  { %1617 = vrot.lane.b32.xlu1 %v1579_v6, %s2376_s27 }
0x106e   :  { %1109 = vrot.lane.b32.xlu1 %v1093_v22, %s2375_s9 }
0x108a   :  { %v1567_v25 = vpop.permute.xlu0 %1566 }
0x108b   :  { %v1578_v26 = vmul.f32 %v1567_v25, %v3048_v5 }
0x108d   :  { %1615 = vrot.lane.b32.xlu2 %v1578_v26, %s2376_s27 }
0x1092   :  { %v1130_v32 = vpop.permute.xlu0 %1129 }
0x1093   :  { %v1138_v34 = vmul.f32 %v1130_v32, %v1093_v22 }
0x1095   :  { %1147 = vrot.lane.b32.xlu2 %v1137_v33, %s2376_s27  ;;  %1149 = vrot.lane.b32.xlu0 %v1138_v34, %s2376_s27 }
0x109a   :  { %v1108_v37 = vpop.permute.xlu0 %1107 }
0x109b   :  { %v1117_v38 = vmul.f32 %v1108_v37, %v3009_v42 }
0x109d   :  { %1353 = vrot.lane.b32.xlu0 %v3019_v51, %s2380_s8 }
0x10d8   :  { %v1618_v5 = vpop.permute.xlu1 %1617 }
0x10e0   :  { %v1110_v29 = vpop.permute.xlu1 %1109 }
0x10e1   :  { %v1118_v51 = vmul.f32 %v1110_v29, %v3016_v48  ;;  %v2004_v48 = vld [vmem:[%s3236_s2 + $0x38] sm:$0xff] }
0x10e7   :  { %v1616_v36 = vpop.permute.xlu2 %1615 }
0x10e8   :  { %2001 = vmatmul.msk.f32.vlgmr.msra.gmra.mxu1 %vm172_vm1, %v1616_v36 }
0x10ef   :  { %v1148_v35 = vpop.permute.xlu2 %1147 }
0x10f0   :  { %v3082_v40 = vadd.f32 %v1148_v35, %v1117_v38  ;;  %2002 = vmatmul.msk.f32.gmra.mxu1 %vm172_vm1, %v1618_v5 }
0x10f2   :  { %2168 = vtanh.f32 %v3082_v40 }
0x10f8   :  { %v2169_v41 = vpop.eup %2168 }
0x10f9   :  { %1171 = vrot.lane.b32.xlu2 %v2169_v41, %s2377_s29 }
0x1107   :  { %v1150_v43 = vpop.permute.xlu0 %1149 }
0x1108   :  { %v3088_v30 = vadd.f32 %v1150_v43, %v1118_v51 }
0x110a   :  { %2170 = vtanh.f32 %v3088_v30 }
0x110f   :  { %v1354_v11 = vpop.permute.xlu0 %1353 }
0x1110   :  { %v2171_v42 = vpop.eup %2170 }
0x1111   :  { %1173 = vrot.lane.b32.xlu1 %v2171_v42, %s2377_s29 }
0x1119   :  { %1355 = vrot.lane.b32.xlu1 %v3025_v31, %s2380_s8 }
0x1153   :  { %v1172_v44 = vpop.permute.xlu2 %1171 }
0x1154   :  { %v3094_v45 = vmul.f32 %v1172_v44, %v1078_v58 }
0x1156   :  { %1365 = vrot.lane.b32.xlu2 %v3094_v45, %s2378_s0 }
0x1165   :  { %v1640_v27 = vpop.f32.mrf.mxu1 }
0x1166   :  { %v1641_v31 = vadd.f32 %v2213_v14, %v1640_v27 }
0x1168   :  { %v1649_v54 = vadd.f32 %v2003_v52, %v1641_v31 }
0x116a   :  { %v3107_v55 = vmul.f32 1.1111112, %v1649_v54 }
0x116d   :  { %v1643_v19 = vpop.f32.mrf.mxu1 }
0x116e   :  { %v1644_v28 = vadd.f32 %v2213_v14, %v1643_v19 }
0x1170   :  { %v1650_v50 = vadd.f32 %v2004_v48, %v1644_v28 }
0x1172   :  { %v1652_v47 = vmul.f32 1.1111112, %v1650_v50 }
0x1174   :  { %1655 = vmax.xlane.f32.xlu1 %v1652_v47 }
0x117f   :  { %1653 = vmax.xlane.f32.xlu2 %v3107_v55 }
0x1183   :  { %v1174_v18 = vpop.permute.xlu1 %1173 }
0x1184   :  { %v3110_v39 = vmul.f32 %v1174_v18, %v1093_v22 }
0x1186   :  { %1367 = vrot.lane.b32.xlu0 %v3110_v39, %s2378_s0 }
0x118b   :  { %v1356_v63 = vpop.permute.xlu1 %1355 }
0x11b0   :  { %v1366_v49 = vpop.permute.xlu2 %1365 }
0x11b1   :  { %v1375_v57 = vsel %vm132_vm0, %v1354_v11, %v1366_v49 }
0x11b2   :  { %1995 = vmatmul.msk.f32.gmra.mxu0 %vm290_vm2, %v1375_v57 }
0x11e7   :  { %v1656_v15 = vpop.xlane.xlu1 %1655 }
0x11e8   :  { %v1658_v16 = vsub.f32 %v1652_v47, %v1656_v15  ;;  %vm1672_vm9 = vcmp.eq.f32.partialorder %v1652_v47, %v1656_v15 }
0x11e9   :  { %v2006_v36 = vsel %vm1672_vm9, 1.0, %v2379_v24 }
0x11ea   :  { %v1661_v4 = vmul.f32 1.442695, %v1658_v16 }
0x11ec   :  { %2172 = vpow2.f32 %v1661_v4 }
0x11f2   :  { %v2173_v46 = vpop.eup %2172  ;;  %v3116_v13 = vpop.xlane.xlu2 %1653 }
0x11f3   :  { %v1657_v23 = vsub.f32 %v3107_v55, %v3116_v13  ;;  %1665 = vadd.xlane.f32.xlu2 %v2173_v46  ;;  %vm1671_vm10 = vcmp.eq.f32.partialorder %v3107_v55, %v3116_v13 }
0x11f4   :  { %v2005_v28 = vsel %vm1671_vm10, 1.0, %v2379_v24 }
0x11f5   :  { %v1659_v20 = vmul.f32 1.442695, %v1657_v23 }
0x11f7   :  { %2174 = vpow2.f32 %v1659_v20 }
0x11f8   :  { %v1368_v58 = vpop.permute.xlu0 %1367 }
0x11f9   :  { %v1376_v59 = vsel %vm132_vm0, %v1356_v63, %v1368_v58 }
0x11fa   :  { %1996 = vmatmul.msk.f32.gmra.mxu0 %vm290_vm2, %v1376_v59 }
0x11fd   :  { %v2175_v53 = vpop.eup %2174 }
0x11fe   :  { %1663 = vadd.xlane.f32.xlu0 %v2175_v53 }
0x122f   :  { %v1412_v61 = vpop.f32.mrf.mxu0 }
0x1230   :  { %v1413_v62 = vadd.f32 %v2966_v60, %v1412_v61 }
0x1232   :  { %v1999_v0 = vmul.f32 -1.442695, %v1413_v62  ;;  %2176 = vtanh.f32 %v1413_v62 }
0x1234   :  { %2178 = vpow2.f32 %v1999_v0 }
0x1238   :  { %v2177_v1 = vpop.eup %2176 }
0x1239   :  { %1526 = vrot.lane.b32.xlu1 %v2177_v1, %s2375_s9 }
0x123a   :  { %v2179_v2 = vpop.eup %2178 }
0x123b   :  { %v1432_v3 = vadd.f32 1.0, %v2179_v2 }
0x123d   :  { %2180 = vrcp.f32 %v1432_v3  ;;  %v1475_v9 = vand.u32 2147483648, %v1432_v3  ;;  %v1473_v12 = vand.u32 2147483647, %v1432_v3  ;;  %vm1469_vm6 = vweird.f32 %v1432_v3 }
0x123f   :  { %v1476_v25 = vor.u32 1.1754944e-38, %v1475_v9  ;;  %vm1474_vm8 = vcmp.eq.f32.partialorder %v1473_v12, 8.507059e+37 }
0x1243   :  { %v2181_v6 = vpop.eup %2180 }
0x1244   :  { %v1465_v7 = vmul.f32 %v2181_v6, %v1432_v3  ;;  %vm1470_vm5 = vweird.f32 %v2181_v6 }
0x1245   :  { %vm1471_vm7 = vmor %vm1469_vm6, %vm1470_vm5 }
0x1246   :  { %v1466_v8 = vsub.f32 1.0, %v1465_v7 }
0x1248   :  { %v1467_v10 = vmul.f32 %v2181_v6, %v1466_v8 }
0x124a   :  { %v1468_v22 = vadd.f32 %v2181_v6, %v1467_v10 }
0x124c   :  { %v1472_v26 = vsel %vm1471_vm7, %v2181_v6, %v1468_v22 }
0x124d   :  { %v3124_v21 = vsel %vm1474_vm8, %v1476_v25, %v1472_v26 }
0x124e   :  { %1506 = vrot.lane.b32.xlu2 %v3124_v21, %s2375_s9 }
0x1266   :  { %v1666_v32 = vpop.xlane.xlu2 %1665 }
0x1267   :  { %2182 = vrcp.f32 %v1666_v32 }
0x126d   :  { %v2183_v33 = vpop.eup %2182 }
0x126e   :  { %v1670_v34 = vmul.f32 %v2183_v33, %v2173_v46 }
0x1270   :  { %v1678_v37 = vsub.f32 %v2006_v36, %v1670_v34 }
0x1271   :  { %v1664_v38 = vpop.xlane.xlu0 %1663 }
0x1272   :  { %v1680_v5 = vadd.f32 %v1678_v37, %v1670_v34  ;;  %2184 = vrcp.f32 %v1664_v38 }
0x1274   :  { %v1690_v35 = vrot.slane %v1680_v5, 1  ;;  %v1691_v41 = vrot.slane %v1680_v5, 2  ;;  %v1692_v29 = vrot.slane %v1680_v5, 3  ;;  %1719 = vst [vmem:[#allocation11 + $0x23] sm:$0x1] %v1680_v5  ;;  %v1693_v51 = vrot.slane %v1680_v5, 4 }
0x1275   :  { %v1694_v43 = vrot.slane %v1680_v5, 5  ;;  %v1695_v42 = vrot.slane %v1680_v5, 6  ;;  %v1696_v19 = vrot.slane %v1680_v5, 7 }
0x1276   :  { %1720 = vst [vmem:[#allocation11 + $0x27] sm:$0x1] %v1690_v35 }
0x1277   :  { %1721 = vst [vmem:[#allocation11 + $0x2b] sm:$0x1] %v1691_v41  ;;  %v1415_v44 = vpop.f32.mrf.mxu0 }
0x1278   :  { %v2185_v27 = vpop.eup %2184  ;;  %1722 = vst [vmem:[#allocation11 + $0x2f] sm:$0x1] %v1692_v29  ;;  %v1416_v48 = vadd.f32 %v2966_v60, %v1415_v44 }
0x1279   :  { %1723 = vst [vmem:[#allocation11 + $0x33] sm:$0x1] %v1693_v51  ;;  %v1669_v14 = vmul.f32 %v2185_v27, %v2175_v53 }
0x127a   :  { %1724 = vst [vmem:[#allocation11 + $0x37] sm:$0x1] %v1694_v43  ;;  %v2000_v50 = vmul.f32 -1.442695, %v1416_v48  ;;  %2186 = vtanh.f32 %v1416_v48 }
0x127b   :  { %1725 = vst [vmem:[#allocation11 + $0x3b] sm:$0x1] %v1695_v42  ;;  %v1677_v47 = vsub.f32 %v2005_v28, %v1669_v14 }
0x127c   :  { %1726 = vst [vmem:[#allocation11 + $0x3f] sm:$0x1] %v1696_v19  ;;  %2188 = vpow2.f32 %v2000_v50 }
0x127d   :  { %v1679_v31 = vadd.f32 %v1677_v47, %v1669_v14 }
0x127f   :  { %v1683_v52 = vrot.slane %v1679_v31, 1  ;;  %v1684_v54 = vrot.slane %v1679_v31, 2  ;;  %v1685_v55 = vrot.slane %v1679_v31, 3  ;;  %1711 = vst [vmem:[#allocation11 + $0x3] sm:$0x1] %v1679_v31  ;;  %1743 = vmatmul.f32.vlgmr.msrb.gmra.mxu3 %v1679_v31  ;;  %v1686_v11 = vrot.slane %v1679_v31, 4 }
0x1280   :  { %v2187_v18 = vpop.eup %2186  ;;  %v1687_v49 = vrot.slane %v1679_v31, 5  ;;  %v1688_v57 = vrot.slane %v1679_v31, 6  ;;  %v1689_v63 = vrot.slane %v1679_v31, 7 }
0x1281   :  { %1712 = vst [vmem:[#allocation11 + $0x7] sm:$0x1] %v1683_v52  ;;  %1528 = vrot.lane.b32.xlu0 %v2187_v18, %s2375_s9 }
0x1282   :  { %v2189_v24 = vpop.eup %2188  ;;  %1713 = vst [vmem:[#allocation11 + $0xb] sm:$0x1] %v1684_v54 }
0x1283   :  { %1714 = vst [vmem:[#allocation11 + $0xf] sm:$0x1] %v1685_v55  ;;  %v1433_v15 = vadd.f32 1.0, %v2189_v24 }
0x1284   :  { %1715 = vst [vmem:[#allocation11 + $0x13] sm:$0x1] %v1686_v11 }
0x1285   :  { %1716 = vst [vmem:[#allocation11 + $0x17] sm:$0x1] %v1687_v49  ;;  %2190 = vrcp.f32 %v1433_v15  ;;  %v1490_v13 = vand.u32 2147483648, %v1433_v15  ;;  %v1488_v20 = vand.u32 2147483647, %v1433_v15  ;;  %vm1484_vm12 = vweird.f32 %v1433_v15 }
0x1286   :  { %1717 = vst [vmem:[#allocation11 + $0x1b] sm:$0x1] %v1688_v57 }
0x1287   :  { %1718 = vst [vmem:[#allocation11 + $0x1f] sm:$0x1] %v1689_v63  ;;  %1746 = vmatmul.f32.gmra.mxu3 %v1680_v5  ;;  %v1491_v59 = vor.u32 1.1754944e-38, %v1490_v13  ;;  %vm1489_vm14 = vcmp.eq.f32.partialorder %v1488_v20, 8.507059e+37 }
0x128b   :  { %v2191_v16 = vpop.eup %2190 }
0x128c   :  { %v1480_v4 = vmul.f32 %v2191_v16, %v1433_v15  ;;  %vm1485_vm11 = vweird.f32 %v2191_v16 }
0x128d   :  { %vm1486_vm13 = vmor %vm1484_vm12, %vm1485_vm11 }
0x128e   :  { %v1481_v46 = vsub.f32 1.0, %v1480_v4 }
0x1290   :  { %v1482_v23 = vmul.f32 %v2191_v16, %v1481_v46 }
0x1292   :  { %v1483_v58 = vadd.f32 %v2191_v16, %v1482_v23 }
0x1294   :  { %v1487_v53 = vsel %vm1486_vm13, %v2191_v16, %v1483_v58 }
0x1295   :  { %v1492_v61 = vsel %vm1489_vm14, %v1491_v59, %v1487_v53  ;;  %v2038_v53 = vld [vmem:[%s3248_s14] ss:$0 sm:$0xff] }
0x1296   :  { %1508 = vrot.lane.b32.xlu1 %v1492_v61, %s2375_s9 }
0x12a8   :  { %v1507_v6 = vpop.permute.xlu2 %1506 }
0x12a9   :  { %v1516_v7 = vmul.f32 %v1507_v6, %v3082_v40 }
0x12ab   :  { %v1527_v62 = vpop.permute.xlu1 %1526 }
0x12ac   :  { %v1536_v0 = vmul.f32 %v1527_v62, %v3124_v21 }
0x12ae   :  { %1546 = vrot.lane.b32.xlu0 %v1536_v0, %s2376_s27 }
0x12f3   :  { %v1529_v1 = vpop.permute.xlu0 %1528 }
0x12f4   :  { %v1537_v2 = vmul.f32 %v1529_v1, %v1492_v61 }
0x12f6   :  { %1548 = vrot.lane.b32.xlu2 %v1537_v2, %s2376_s27 }
0x1302   :  { %v1744_v3 = vpop.f32.mrf.mxu3 }
0x1303   :  { %1752 = vrot.lane.b32.xlu2 %v1744_v3, %s2380_s8 }
0x1308   :  { %v1509_v12 = vpop.permute.xlu1 %1508 }
0x1309   :  { %v1517_v22 = vmul.f32 %v1509_v12, %v3088_v30 }
0x130a   :  { %v1747_v40 = vpop.f32.mrf.mxu3 }
0x1320   :  { %v1547_v8 = vpop.permute.xlu0 %1546 }
0x1321   :  { %v3140_v9 = vadd.f32 %v1547_v8, %v1516_v7 }
0x1323   :  { %2192 = vtanh.f32 %v3140_v9 }
0x1329   :  { %v2193_v10 = vpop.eup %2192 }
0x132a   :  { %1570 = vrot.lane.b32.xlu0 %v2193_v10, %s2377_s29 }
0x1350   :  { %v1549_v25 = vpop.permute.xlu2 %1548 }
0x1351   :  { %v3145_v26 = vadd.f32 %v1549_v25, %v1517_v22 }
0x1353   :  { %2194 = vtanh.f32 %v3145_v26 }
0x1359   :  { %v2195_v32 = vpop.eup %2194 }
0x135a   :  { %1572 = vrot.lane.b32.xlu1 %v2195_v32, %s2377_s29 }
0x135d   :  { %v1753_v37 = vpop.permute.xlu2 %1752 }
0x1362   :  { %1754 = vrot.lane.b32.xlu1 %v1747_v40, %s2380_s8 }
0x139c   :  { %v1571_v33 = vpop.permute.xlu0 %1570 }
0x139d   :  { %v3151_v34 = vmul.f32 %v1571_v33, %v3124_v21 }
0x139f   :  { %1760 = vrot.lane.b32.xlu0 %v3151_v34, %s2378_s0 }
0x13cc   :  { %v1573_v36 = vpop.permute.xlu1 %1572 }
0x13cd   :  { %v3155_v30 = vmul.f32 %v1573_v36, %v1492_v61 }
0x13cf   :  { %1762 = vrot.lane.b32.xlu2 %v3155_v30, %s2378_s0  ;;  %s2382_s0 = smov [#allocation11]  }
0x13d0   :  { %s1916_s4 = sshll.u32 %s2382_s0, 4  ;;  %s1917_s4 = int_to_ptr.vmem [resolvable:$true] %s1916_s4 }
0x13d4   :  { %v1755_v35 = vpop.permute.xlu1 %1754 }
0x1411   :  { %v1761_v38 = vpop.permute.xlu0 %1760 }
0x1412   :  { %v1766_v5 = vsel %vm132_vm0, %v1753_v37, %v1761_v38 }
0x1413   :  { %2007 = vmatmul.msk.f32.vlgmr.msrb.gmra.mxu2 %vm290_vm2, %v1766_v5 }
0x1429   :  { %v1763_v41 = vpop.permute.xlu2 %1762 }
0x142a   :  { %v1767_v21 = vsel %vm132_vm0, %v1755_v35, %v1763_v41 }
0x142b   :  { %2008 = vmatmul.msk.f32.gmra.mxu2 %vm290_vm2, %v1767_v21 }
0x1496   :  { %v1791_v29 = vpop.f32.mrf.mxu2 }
0x1497   :  { %v1792_v51 = vadd.f32 %v2966_v60, %v1791_v29 }
0x1499   :  { %v2009_v43 = vmul.f32 -1.442695, %v1792_v51  ;;  %2196 = vtanh.f32 %v1792_v51 }
0x149b   :  { %2198 = vpow2.f32 %v2009_v43  ;;  %v2381_v43 = vmov 0  }
0x149c   :  { %2030 = vset.pattern.permute.xlu1 %v2381_v43  ;;  %2031 = vset.pattern.permute.xlu2 %v2381_v43 }
0x149d   :  { %2032 = vset.pattern.permute.xlu0 %v2381_v43 }
0x149f   :  { %v2197_v42 = vpop.eup %2196 }
0x14a0   :  { %1849 = vrot.lane.b32.xlu0 %v2197_v42, %s2375_s9  ;;  %v2039_v42 = vld [vmem:[#allocation2] ss:$0 sm:$0xff] }
0x14a1   :  { %v2199_v44 = vpop.eup %2198 }
0x14a2   :  { %v1803_v27 = vadd.f32 1.0, %v2199_v44 }
0x14a4   :  { %2200 = vrcp.f32 %v1803_v27  ;;  %v1816_v50 = vand.u32 2147483648, %v1803_v27  ;;  %v1814_v52 = vand.u32 2147483647, %v1803_v27  ;;  %vm1810_vm2 = vweird.f32 %v1803_v27 }
0x14a6   :  { %v1817_v18 = vor.u32 1.1754944e-38, %v1816_v50  ;;  %vm1815_vm3 = vcmp.eq.f32.partialorder %v1814_v52, 8.507059e+37 }
0x14aa   :  { %v2201_v19 = vpop.eup %2200 }
0x14ab   :  { %v1806_v48 = vmul.f32 %v2201_v19, %v1803_v27  ;;  %vm1811_vm0 = vweird.f32 %v2201_v19 }
0x14ac   :  { %vm1812_vm15 = vmor %vm1810_vm2, %vm1811_vm0 }
0x14ad   :  { %v1807_v14 = vsub.f32 1.0, %v1806_v48 }
0x14ae   :  { %v1794_v28 = vpop.f32.mrf.mxu2 }
0x14af   :  { %v1795_v47 = vadd.f32 %v2966_v60, %v1794_v28  ;;  %v1808_v31 = vmul.f32 %v2201_v19, %v1807_v14 }
0x14b1   :  { %v2010_v54 = vmul.f32 -1.442695, %v1795_v47  ;;  %2202 = vtanh.f32 %v1795_v47  ;;  %v1809_v55 = vadd.f32 %v2201_v19, %v1808_v31 }
0x14b3   :  { %2204 = vpow2.f32 %v2010_v54  ;;  %v1813_v11 = vsel %vm1812_vm15, %v2201_v19, %v1809_v55 }
0x14b4   :  { %v3166_v49 = vsel %vm1815_vm3, %v1817_v18, %v1813_v11 }
0x14b5   :  { %1839 = vrot.lane.b32.xlu2 %v3166_v49, %s2375_s9 }
0x14b7   :  { %v2203_v24 = vpop.eup %2202 }
0x14b8   :  { %1851 = vrot.lane.b32.xlu1 %v2203_v24, %s2375_s9 }
0x14b9   :  { %v2205_v60 = vpop.eup %2204 }
0x14ba   :  { %v1804_v57 = vadd.f32 1.0, %v2205_v60 }
0x14bc   :  { %2206 = vrcp.f32 %v1804_v57  ;;  %v1831_v4 = vand.u32 2147483648, %v1804_v57  ;;  %v1829_v13 = vand.u32 2147483647, %v1804_v57  ;;  %vm1825_vm5 = vweird.f32 %v1804_v57 }
0x14be   :  { %v1832_v20 = vor.u32 1.1754944e-38, %v1831_v4  ;;  %vm1830_vm7 = vcmp.eq.f32.partialorder %v1829_v13, 8.507059e+37 }
0x14c2   :  { %v2207_v63 = vpop.eup %2206 }
0x14c3   :  { %v1821_v15 = vmul.f32 %v2207_v63, %v1804_v57  ;;  %vm1826_vm4 = vweird.f32 %v2207_v63 }
0x14c4   :  { %vm1827_vm6 = vmor %vm1825_vm5, %vm1826_vm4 }
0x14c5   :  { %v1822_v16 = vsub.f32 1.0, %v1821_v15 }
0x14c7   :  { %v1823_v46 = vmul.f32 %v2207_v63, %v1822_v16 }
0x14c9   :  { %v1824_v23 = vadd.f32 %v2207_v63, %v1823_v46 }
0x14cb   :  { %v1828_v58 = vsel %vm1827_vm6, %v2207_v63, %v1824_v23 }
0x14cc   :  { %v3171_v59 = vsel %vm1830_vm7, %v1832_v20, %v1828_v58 }
0x14cd   :  { %1841 = vrot.lane.b32.xlu0 %v3171_v59, %s2375_s9 }
0x14d5   :  { %779 = vrot.lane.b32.xlu0 %v2038_v53, %s2375_s9  ;;  %v275_v53 = vlaneseq }
0x150f   :  { %v1840_v10 = vpop.permute.xlu2 %1839 }
0x1510   :  { %v1845_v12 = vmul.f32 %v1840_v10, %v3140_v9 }
0x1512   :  { %v1850_v61 = vpop.permute.xlu0 %1849 }
0x1513   :  { %v1855_v62 = vmul.f32 %v1850_v61, %v3166_v49  ;;  %v276_v61 = vand.u32 127, %v275_v53 }
0x1515   :  { %1859 = vrot.lane.b32.xlu1 %v1855_v62, %s2376_s27  ;;  %vm1183_vm8 = vcmp.eq.s32.totalorder %v276_v61, 1  ;;  %vm1582_vm9 = vcmp.eq.s32.totalorder %v276_v61, 2  ;;  %vm1879_vm10 = vcmp.eq.s32.totalorder %v276_v61, 3 }
0x152a   :  { %v1852_v6 = vpop.permute.xlu1 %1851 }
0x152b   :  { %v1856_v7 = vmul.f32 %v1852_v6, %v3171_v59 }
0x153f   :  { %v1842_v0 = vpop.permute.xlu0 %1841 }
0x1540   :  { %v1846_v9 = vmul.f32 %v1842_v0, %v3145_v26 }
0x1547   :  { %v3181_v1 = vpop.permute.xlu0 %779 }
0x1548   :  { %v783_v2 = vmul.f32 %v3181_v1, %v3038_v56  ;;  %v782_v3 = vmul.f32 %v3181_v1, %v3031_v17  ;;  %v1184_v8 = vmul.f32 %v3094_v45, %v3181_v1  ;;  %v1185_v56 = vmul.f32 %v3110_v39, %v3181_v1 }
0x1549   :  { %v1583_v17 = vmul.f32 %v3151_v34, %v3181_v1  ;;  %v1584_v29 = vmul.f32 %v3155_v30, %v3181_v1 }
0x154a   :  { %788 = vrot.lane.b32.xlu2 %v783_v2, %s2376_s27  ;;  %786 = vrot.lane.b32.xlu1 %v782_v3, %s2376_s27 }
0x1552   :  { %1861 = vrot.lane.b32.xlu2 %v1856_v7, %s2376_s27 }
0x155a   :  { %1188 = vrot.lane.b32.xlu2 %v1184_v8, %s2376_s27 }
0x1562   :  { %1190 = vrot.lane.b32.xlu2 %v1185_v56, %s2376_s27 }
0x156a   :  { %1587 = vrot.lane.b32.xlu2 %v1583_v17, %s2376_s27 }
0x1587   :  { %v1860_v22 = vpop.permute.xlu1 %1859 }
0x1588   :  { %v1865_v25 = vadd.f32 %v1860_v22, %v1845_v12 }
0x158a   :  { %2208 = vtanh.f32 %v1865_v25 }
0x1590   :  { %v2209_v32 = vpop.eup %2208 }
0x1591   :  { %1871 = vrot.lane.b32.xlu1 %v2209_v32, %s2377_s29 }
0x15a4   :  { %v789_v45 = vpop.permute.xlu2 %788 }
0x15a5   :  { %v795_v36 = vsel %vm172_vm1, %v789_v45, 0.0 }
0x15ac   :  { %v1862_v40 = vpop.permute.xlu2 %1861 }
0x15ad   :  { %v1866_v5 = vadd.f32 %v1862_v40, %v1846_v9 }
0x15af   :  { %2210 = vtanh.f32 %v1866_v5 }
0x15b4   :  { %v1189_v33 = vpop.permute.xlu2 %1188 }
0x15b5   :  { %v1194_v39 = vsel %vm172_vm1, %v1189_v33, 0.0  ;;  %v2211_v21 = vpop.eup %2210 }
0x15b6   :  { %1195 = vadd.xlane.f32.xlu2 %v1194_v39 }
0x15bb   :  { %796 = vadd.xlane.f32.xlu1 %v795_v36 }
0x15bc   :  { %v1191_v34 = vpop.permute.xlu2 %1190  ;;  %v787_v37 = vpop.permute.xlu1 %786 }
0x15bd   :  { %v792_v38 = vsel %vm172_vm1, %v787_v37, 0.0  ;;  %v1197_v51 = vsel %vm172_vm1, %v1191_v34, 0.0 }
0x15be   :  { %793 = vadd.xlane.f32.xlu0 %v792_v38 }
0x15c4   :  { %v1588_v35 = vpop.permute.xlu2 %1587 }
0x15c5   :  { %v1593_v41 = vsel %vm172_vm1, %v1588_v35, 0.0 }
0x15c6   :  { %1594 = vadd.xlane.f32.xlu1 %v1593_v41 }
0x15ce   :  { %1873 = vrot.lane.b32.xlu2 %v2211_v21, %s2377_s29 }
0x15d2   :  { %1589 = vrot.lane.b32.xlu0 %v1584_v29, %s2376_s27 }
0x15fc   :  { %1198 = vadd.xlane.f32.xlu0 %v1197_v51 }
0x1603   :  { %v1872_v26 = vpop.permute.xlu1 %1871 }
0x1604   :  { %v1877_v47 = vmul.f32 %v1872_v26, %v3166_v49 }
0x1606   :  { %v1880_v31 = vmul.f32 %v1877_v47, %v3181_v1 }
0x1629   :  { %v1196_v50 = vpop.xlane.xlu2 %1195 }
0x162a   :  { %v1200_v16 = vadd.f32 %v2039_v42, %v1196_v50 }
0x162e   :  { %v797_v44 = vpop.xlane.xlu1 %796 }
0x162f   :  { %v802_v27 = vadd.f32 %v2039_v42, %v797_v44 }
0x1631   :  { %810 = vperm.xlu1 %2030, %v802_v27   ;;  %v794_v14 = vpop.xlane.xlu0 %793  ;;  %v1874_v52 = vpop.permute.xlu2 %1873 }
0x1632   :  { %v1878_v54 = vmul.f32 %v1874_v52, %v3171_v59  ;;  %v801_v18 = vadd.f32 %v2039_v42, %v794_v14 }
0x1634   :  { %v1881_v55 = vmul.f32 %v1878_v54, %v3181_v1 }
0x1639   :  { %v1595_v19 = vpop.xlane.xlu1 %1594 }
0x163a   :  { %v1599_v48 = vadd.f32 %v2039_v42, %v1595_v19 }
0x163c   :  { %1603 = vperm.xlu1 %2030, %v1599_v48  }
0x1644   :  { %v1590_v28 = vpop.permute.xlu0 %1589 }
0x1645   :  { %v1596_v30 = vsel %vm172_vm1, %v1590_v28, 0.0 }
0x1646   :  { %1597 = vadd.xlane.f32.xlu2 %v1596_v30 }
0x165e   :  { %1884 = vrot.lane.b32.xlu2 %v1880_v31, %s2376_s27 }
0x1666   :  { %1886 = vrot.lane.b32.xlu2 %v1881_v55, %s2376_s27  ;;  %s1918_s27 = sshll.u32 %s3250_s16, 4  ;;  %s2384_s16 = smov [#allocation12]   ;;  %s1919_s27 = int_to_ptr.hbm [resolvable:$true] %s1918_s27 }
0x1667   :  { %1924 = dma.vmem_to_hbm [thread:$0]  %s1917_s4, 1024, %s1919_s27, [#allocation5], %s2377_s29, %s2377_s29, %s2383_s13  }
0x1668   :  { %s1929_s29 = sshll.u32 %s2384_s16, 4  ;;  %s1930_s29 = int_to_ptr.vmem [resolvable:$true] %s1929_s29 }
0x166e   :  { %805 = vperm.xlu2 %2031, %v801_v18  }
0x166f   :  { %v1199_v11 = vpop.xlane.xlu0 %1198 }
0x1670   :  { %v1201_v24 = vadd.f32 %v2039_v42, %v1199_v11 }
0x1676   :  { %1209 = vperm.xlu2 %2031, %v1201_v24  }
0x16a3   :  { %v811_v0 = vpop.permute.xlu1 %810 }
0x16ae   :  { %v1604_v8 = vpop.permute.xlu1 %1603 }
0x16b9   :  { %v1598_v60 = vpop.xlane.xlu2 %1597 }
0x16ba   :  { %v1600_v4 = vadd.f32 %v2039_v42, %v1598_v60 }
0x16c1   :  { %v1885_v57 = vpop.permute.xlu2 %1884 }
0x16c2   :  { %v1890_v49 = vsel %vm172_vm1, %v1885_v57, 0.0 }
0x16c3   :  { %1891 = vadd.xlane.f32.xlu0 %v1890_v49 }
0x16c9   :  { %v1887_v63 = vpop.permute.xlu2 %1886 }
0x16ca   :  { %v1893_v15 = vsel %vm172_vm1, %v1887_v63, 0.0  ;;  %vm776_vm1 = vcmp.eq.s32.totalorder %v276_v61, 0 }
0x16cb   :  { %1894 = vadd.xlane.f32.xlu2 %v1893_v15  ;;  %v814_v1 = vsel %vm776_vm1, %v811_v0, 0.0 }
0x16d1   :  { %v806_v46 = vpop.permute.xlu2 %805 }
0x16d2   :  { %v813_v17 = vsel %vm776_vm1, %v806_v46, 0.0 }
0x16d7   :  { %1204 = vperm.xlu0 %2032, %v1200_v16  }
0x16d9   :  { %v1210_v13 = vpop.permute.xlu2 %1209 }
0x16da   :  { %v1213_v2 = vsel %vm1183_vm8, %v1210_v13, %v814_v1 }
0x16e3   :  { %1608 = vperm.xlu2 %2031, %v1600_v4  }
0x1736   :  { %v1892_v23 = vpop.xlane.xlu0 %1891 }
0x1737   :  { %v1896_v20 = vadd.f32 %v2039_v42, %v1892_v23 }
0x1739   :  { %1900 = vperm.xlu1 %2030, %v1896_v20  }
0x173e   :  { %v1895_v58 = vpop.xlane.xlu2 %1894 }
0x173f   :  { %v1897_v59 = vadd.f32 %v2039_v42, %v1895_v58 }
0x1741   :  { %1905 = vperm.xlu2 %2031, %v1897_v59  }
0x1746   :  { %v1609_v62 = vpop.permute.xlu2 %1608 }
0x1747   :  { %v1612_v3 = vsel %vm1582_vm9, %v1609_v62, %v1213_v2 }
0x1749   :  { %v1205_v56 = vpop.permute.xlu0 %1204 }
0x174a   :  { %v1212_v10 = vsel %vm1183_vm8, %v1205_v56, %v813_v17 }
0x174b   :  { %v1611_v12 = vsel %vm1582_vm9, %v1604_v8, %v1212_v10 }
0x179b   :  { %v1906_v6 = vpop.permute.xlu2 %1905 }
0x179c   :  { %v1909_v7 = vsel %vm1879_vm10, %v1906_v6, %v1612_v3 }
0x179d   :  { %1911 = vst [vmem:[#allocation12 + $0x8] sm:$0xff] %v1909_v7 }
0x17ab   :  { %v1901_v22 = vpop.permute.xlu1 %1900 }
0x17ac   :  { %v1908_v25 = vsel %vm1879_vm10, %v1901_v22, %v1611_v12 }
0x17ad   :  { %1910 = vst [vmem:[#allocation12] sm:$0xff] %v1908_v25 }
0x17ae   :  { %1937 = dma.vmem_to_hbm [thread:$0]  %s1930_s29, 256, %s1932_s18, [#allocation13], %s2369_s20, %s2369_s20, %s2370_s15  }
0x17af   :  { %2364 = dma.done.wait [#allocation5], 1024  }
0x17b0   :  { %2365 = vsyncadd [#allocation5], 4294966272 }
0x17b1   :  { %2366 = dma.done.wait [#allocation13], 256  }
0x17b2   :  { %2367 = vsyncadd [#allocation13], 4294967040 }
0x17b3   :  { %1946 = vsyncpa [#allocation4], 1 }
0x17b4   :  { %1947 = vsyncpa [#allocation7], 1 }
0x17b5   :  { %1948 = vsyncpa [#allocation10], 1 }
0x17b6   :  { %1949 = vsyncpa [#allocation5], 1 }
0x17b7   :  { %1950 = vsyncpa [#allocation13], 1 }

</bundles_post_ra>
